<compile_context>
chip_gen: v6e
topology: v6e:2x2x1
jax: 0.10.0
libtpu: 0.0.40
codegen_flags: <defaults>
</compile_context>

<pallas_src>
import functools

import jax
import jax.numpy as jnp
import numpy as np
from jax import lax
from jax.experimental import pallas as pl
from jax.experimental.pallas import tpu as pltpu


def linear_attention_kernel(x_ref, wqkv_ref, wout_ref, bout_ref, g_ref, o_ref,
                            qkv_ref, attn_ref,
                            *, heads, dim_head, batch_block, seq_len, scale,
                            eps):
    hidden = heads * dim_head

    x = x_ref[...].astype(jnp.float32)                     # (C, L), L = bb*N
    wqkv = wqkv_ref[...].astype(jnp.float32)               # (3*H*Dh, C)

    # to_qkv: 1x1 Conv1d (no bias) == one lane-dense matmul over channels.
    qkv_ref[...] = jnp.dot(wqkv, x, preferred_element_type=jnp.float32)

    # --- q softmax over the head-dim (channel) axis.  Columns are independent,
    #     so all batches / sequence positions are processed at once per head.
    #     The `* scale` is fused into the reciprocal of the softmax denominator.
    for h in range(heads):
        r0 = h * dim_head
        qh = qkv_ref[r0:r0 + dim_head, :]                   # (Dh, L)
        qh = jnp.exp(qh - jnp.max(qh, axis=0, keepdims=True))
        inv = scale / jnp.sum(qh, axis=0, keepdims=True)    # (1, L) divide only
        qkv_ref[r0:r0 + dim_head, :] = qh * inv

    # --- k softmax over the sequence axis, per batch element (rows are
    #     independent, so all heads are processed at once).
    for b in range(batch_block):
        c0 = b * seq_len
        kb = qkv_ref[hidden:2 * hidden, c0:c0 + seq_len]    # (H*Dh, N)
        kb = jnp.exp(kb - jnp.max(kb, axis=1, keepdims=True))
        inv = 1.0 / jnp.sum(kb, axis=1, keepdims=True)      # (H*Dh, 1)
        qkv_ref[hidden:2 * hidden, c0:c0 + seq_len] = kb * inv

    # --- per (batch, head): context + output, as an NT then a plain NN matmul
    #     (avoids the axis-0/axis-0 contraction that forces an XLU transpose).
    for b in range(batch_block):
        c0 = b * seq_len
        for h in range(heads):
            r0 = h * dim_head
            qh = qkv_ref[r0:r0 + dim_head, c0:c0 + seq_len]
            kh = qkv_ref[hidden + r0:hidden + r0 + dim_head, c0:c0 + seq_len]
            vh = qkv_ref[2 * hidden + r0:2 * hidden + r0 + dim_head,
                         c0:c0 + seq_len]
            # ctxT[e, d] = sum_n v[e, n] * k[d, n]   (== context[d, e])
            ctxT = lax.dot_general(vh, kh, (((1,), (1,)), ((), ())),
                                   preferred_element_type=jnp.float32)
            # out[e, n] = sum_d ctxT[e, d] * q[d, n]  -- plain NN matmul.
            attn_ref[r0:r0 + dim_head, c0:c0 + seq_len] = jnp.dot(
                ctxT, qh, preferred_element_type=jnp.float32)

    # to_out[0]: 1x1 Conv1d with bias (lane-dense matmul over channels).
    y = jnp.dot(wout_ref[...].astype(jnp.float32), attn_ref[...],
                preferred_element_type=jnp.float32) + bout_ref[...]

    # to_out[1]: LayerNorm over the channel axis (biased variance).
    mean = jnp.mean(y, axis=0, keepdims=True)
    var = jnp.mean(jnp.square(y - mean), axis=0, keepdims=True)
    o_ref[...] = ((y - mean) * lax.rsqrt(var + eps) * g_ref[...]).astype(
        o_ref.dtype)


def _pick_batch_block(B, N, C, hidden, vmem_budget=16 * 1024 * 1024):
    """Largest divisor of B whose per-step VMEM residency stays in budget."""
    # f32 bytes per batch element: qkv + attn scratch plus (double-buffered)
    # x and out blocks.
    per_batch = 4 * N * (3 * hidden + hidden + 4 * C)
    bb = max(1, min(B, vmem_budget // max(per_batch, 1)))
    while B % bb:
        bb -= 1
    return bb


def linear_attention(x, w_qkv, w_out, b_out, g, *, heads, dim_head):
    B, C, N = x.shape
    hidden = heads * dim_head
    scale = dim_head ** -0.5
    eps = 1e-5 if x.dtype == jnp.float32 else 1e-3   # PyTorch LayerNorm rule

    # TODO(synk): for ragged N, pad to a multiple of 128 with masking of the
    # k-softmax; here N is assumed lane-aligned (128-multiple) as in the test.
    bb = _pick_batch_block(B, N, C, hidden)
    L = bb * N

    # Fold batch into the lane (sequence) axis: (B, C, N) -> (C, B*N).
    x_cl = jnp.transpose(x, (1, 0, 2)).reshape(C, B * N)

    kernel = functools.partial(
        linear_attention_kernel, heads=heads, dim_head=dim_head,
        batch_block=bb, seq_len=N, scale=scale, eps=eps)

    out_cl = pl.pallas_call(
        kernel,
        out_shape=jax.ShapeDtypeStruct((C, B * N), x.dtype),
        grid_spec=pltpu.PrefetchScalarGridSpec(
            num_scalar_prefetch=0,
            grid=(B // bb,),
            in_specs=[
                pl.BlockSpec((C, L), lambda i: (0, i)),            # x slab
                pl.BlockSpec((3 * hidden, C), lambda i: (0, 0)),   # W_qkv
                pl.BlockSpec((C, hidden), lambda i: (0, 0)),       # W_out
                pl.BlockSpec((C, 1), lambda i: (0, 0)),            # bias_out
                pl.BlockSpec((C, 1), lambda i: (0, 0)),            # layernorm g
            ],
            out_specs=pl.BlockSpec((C, L), lambda i: (0, i)),
            scratch_shapes=[
                pltpu.VMEM((3 * hidden, L), jnp.float32),          # qkv
                pltpu.VMEM((hidden, L), jnp.float32),              # attn
            ]),
        compiler_params=pltpu.CompilerParams(
            dimension_semantics=("parallel",)),     # batch blocks independent
    )(x_cl, w_qkv, w_out, b_out.reshape(C, 1), g.reshape(C, 1))

    # (C, B*N) -> (B, C, N)
    return out_cl.reshape(C, B, N).transpose(1, 0, 2)


def reference(x, w_qkv, w_out, b_out, g, *, heads, dim_head):
    """Pure-JAX reference mirroring the PyTorch forward."""
    B, C, N = x.shape
    hidden = heads * dim_head
    scale = dim_head ** -0.5
    qkv = jnp.einsum('oc,bcn->bon', w_qkv, x)
    q, k, v = jnp.split(qkv, 3, axis=1)
    q, k, v = (t.reshape(B, heads, dim_head, N) for t in (q, k, v))
    q = jax.nn.softmax(q, axis=-2) * scale
    k = jax.nn.softmax(k, axis=-1)
    context = jnp.einsum('bhdn,bhen->bhde', k, v)
    out = jnp.einsum('bhde,bhdn->bhen', context, q).reshape(B, hidden, N)
    y = jnp.einsum('oc,bcn->bon', w_out, out) + b_out[None, :, None]
    mean = jnp.mean(y, axis=1, keepdims=True)
    var = jnp.mean((y - mean) ** 2, axis=1, keepdims=True)
    return (y - mean) * lax.rsqrt(var + 1e-5) * g[None, :, None]


if __name__ == "__main__":
    heads, dim_head = 4, 32           # module defaults
    dim = 16                          # channels (dim)
    B, N = 2, 128                     # batch, sequence length
    hidden = heads * dim_head

    key = jax.random.PRNGKey(0)
    k1, k2, k3, k4 = jax.random.split(key, 4)
    x = jax.random.normal(k1, (B, dim, N), dtype=jnp.float32)
    # Deterministic synthetic parameters (shapes from the PyTorch __init__).
    w_qkv = jax.random.normal(k2, (3 * hidden, dim), dtype=jnp.float32) * 0.1
    w_out = jax.random.normal(k3, (dim, hidden), dtype=jnp.float32) * 0.1
    b_out = jax.random.normal(k4, (dim,), dtype=jnp.float32) * 0.1
    g = jnp.ones((dim,), dtype=jnp.float32)              # LayerNorm.g init

    out = linear_attention(x, w_qkv, w_out, b_out, g,
                           heads=heads, dim_head=dim_head)
    out = jax.block_until_ready(out)

    ref = reference(x, w_qkv, w_out, b_out, g, heads=heads, dim_head=dim_head)
    if not np.allclose(np.asarray(out), np.asarray(ref), atol=1e-3, rtol=1e-3):
        raise AssertionError("Pallas output does not match JAX reference")

    print("KERNEL_OK")
</pallas_src>

<mosaic_0001>
module attributes {stable_mosaic.version = 11 : i64} {
  func.func @linear_attention_kernel(%arg0: i32, %arg1: memref<16x256xf32, #tpu.memory_space<vmem>>, %arg2: memref<384x16xf32, #tpu.memory_space<vmem>>, %arg3: memref<16x128xf32, #tpu.memory_space<vmem>>, %arg4: memref<16x1xf32, #tpu.memory_space<vmem>>, %arg5: memref<16x1xf32, #tpu.memory_space<vmem>>, %arg6: memref<16x256xf32, #tpu.memory_space<vmem>>, %arg7: memref<384x256xf32, #tpu.memory_space<vmem>>, %arg8: memref<128x256xf32, #tpu.memory_space<vmem>>) attributes {dimension_semantics = [#tpu.dimension_semantics<parallel>], iteration_bounds = array<i64: 1>, scalar_prefetch = 0 : i64, scratch_operands = 2 : i64, tpu.core_type = #tpu.core_type<tc>, window_params = [{transform_indices = @transform_0, window_bounds = array<i64: 16, 256>}, {pipeline_mode = #tpu.pipeline_mode<synchronous>, transform_indices = @transform_1, window_bounds = array<i64: 384, 16>}, {pipeline_mode = #tpu.pipeline_mode<synchronous>, transform_indices = @transform_2, window_bounds = array<i64: 16, 128>}, {pipeline_mode = #tpu.pipeline_mode<synchronous>, transform_indices = @transform_3, window_bounds = array<i64: 16, 1>}, {pipeline_mode = #tpu.pipeline_mode<synchronous>, transform_indices = @transform_4, window_bounds = array<i64: 16, 1>}, {transform_indices = @transform_5, window_bounds = array<i64: 16, 256>}]} {
    %c0 = arith.constant 0 : index
    %c0_0 = arith.constant 0 : index
    %0 = vector.load %arg1[%c0, %c0_0] : memref<16x256xf32, #tpu.memory_space<vmem>>, vector<16x256xf32>
    %c0_1 = arith.constant 0 : index
    %c0_2 = arith.constant 0 : index
    %1 = vector.load %arg2[%c0_1, %c0_2] : memref<384x16xf32, #tpu.memory_space<vmem>>, vector<384x16xf32>
    %cst = arith.constant dense<0.000000e+00> : vector<384x256xf32>
    %2 = tpu.matmul %1, %0, %cst {dimension_numbers = #tpu.dot_dimension_numbers<[1], [0], [0], [1], [0, 0, 1, 1], [], []>} : vector<384x16xf32>, vector<16x256xf32>, vector<384x256xf32> -> vector<384x256xf32>
    %c0_3 = arith.constant 0 : index
    %c0_4 = arith.constant 0 : index
    %3 = vector.load %arg7[%c0_3, %c0_4] : memref<384x256xf32, #tpu.memory_space<vmem>>, vector<384x256xf32>
    tpu.vector_store %arg7[%c0_3, %c0_4], %2 {strides = array<i32>} : memref<384x256xf32, #tpu.memory_space<vmem>>, vector<384x256xf32>,
    %c0_5 = arith.constant 0 : index
    %c0_6 = arith.constant 0 : index
    %4 = vector.load %arg7[%c0_5, %c0_6] : memref<384x256xf32, #tpu.memory_space<vmem>>, vector<32x256xf32>
    %cst_7 = arith.constant dense<0xFF800000> : vector<256xf32>
    %5 = vector.multi_reduction <maximumf>, %4, %cst_7 [0] : vector<32x256xf32> to vector<256xf32>
    %6 = vector.shape_cast %5 : vector<256xf32> to vector<1x256xf32>
    %7 = vector.broadcast %6 : vector<1x256xf32> to vector<32x256xf32>
    %8 = arith.subf %4, %7 : vector<32x256xf32>
    %9 = math.exp %8 : vector<32x256xf32>
    %cst_8 = arith.constant dense<0.000000e+00> : vector<256xf32>
    %10 = vector.multi_reduction <add>, %9, %cst_8 [0] : vector<32x256xf32> to vector<256xf32>
    %11 = vector.shape_cast %10 : vector<256xf32> to vector<1x256xf32>
    %cst_9 = arith.constant 0.176776692 : f32
    %12 = vector.broadcast %cst_9 : f32 to vector<1x256xf32>
    %13 = arith.divf %12, %11 : vector<1x256xf32>
    %14 = vector.broadcast %13 : vector<1x256xf32> to vector<32x256xf32>
    %15 = arith.mulf %9, %14 : vector<32x256xf32>
    %c0_10 = arith.constant 0 : index
    %c0_11 = arith.constant 0 : index
    %16 = vector.load %arg7[%c0_10, %c0_11] : memref<384x256xf32, #tpu.memory_space<vmem>>, vector<32x256xf32>
    tpu.vector_store %arg7[%c0_10, %c0_11], %15 {strides = array<i32>} : memref<384x256xf32, #tpu.memory_space<vmem>>, vector<32x256xf32>,
    %c32 = arith.constant 32 : index
    %c0_12 = arith.constant 0 : index
    %17 = vector.load %arg7[%c32, %c0_12] : memref<384x256xf32, #tpu.memory_space<vmem>>, vector<32x256xf32>
    %cst_13 = arith.constant dense<0xFF800000> : vector<256xf32>
    %18 = vector.multi_reduction <maximumf>, %17, %cst_13 [0] : vector<32x256xf32> to vector<256xf32>
    %19 = vector.shape_cast %18 : vector<256xf32> to vector<1x256xf32>
    %20 = vector.broadcast %19 : vector<1x256xf32> to vector<32x256xf32>
    %21 = arith.subf %17, %20 : vector<32x256xf32>
    %22 = math.exp %21 : vector<32x256xf32>
    %cst_14 = arith.constant dense<0.000000e+00> : vector<256xf32>
    %23 = vector.multi_reduction <add>, %22, %cst_14 [0] : vector<32x256xf32> to vector<256xf32>
    %24 = vector.shape_cast %23 : vector<256xf32> to vector<1x256xf32>
    %cst_15 = arith.constant 0.176776692 : f32
    %25 = vector.broadcast %cst_15 : f32 to vector<1x256xf32>
    %26 = arith.divf %25, %24 : vector<1x256xf32>
    %27 = vector.broadcast %26 : vector<1x256xf32> to vector<32x256xf32>
    %28 = arith.mulf %22, %27 : vector<32x256xf32>
    %c32_16 = arith.constant 32 : index
    %c0_17 = arith.constant 0 : index
    %29 = vector.load %arg7[%c32_16, %c0_17] : memref<384x256xf32, #tpu.memory_space<vmem>>, vector<32x256xf32>
    tpu.vector_store %arg7[%c32_16, %c0_17], %28 {strides = array<i32>} : memref<384x256xf32, #tpu.memory_space<vmem>>, vector<32x256xf32>,
    %c64 = arith.constant 64 : index
    %c0_18 = arith.constant 0 : index
    %30 = vector.load %arg7[%c64, %c0_18] : memref<384x256xf32, #tpu.memory_space<vmem>>, vector<32x256xf32>
    %cst_19 = arith.constant dense<0xFF800000> : vector<256xf32>
    %31 = vector.multi_reduction <maximumf>, %30, %cst_19 [0] : vector<32x256xf32> to vector<256xf32>
    %32 = vector.shape_cast %31 : vector<256xf32> to vector<1x256xf32>
    %33 = vector.broadcast %32 : vector<1x256xf32> to vector<32x256xf32>
    %34 = arith.subf %30, %33 : vector<32x256xf32>
    %35 = math.exp %34 : vector<32x256xf32>
    %cst_20 = arith.constant dense<0.000000e+00> : vector<256xf32>
    %36 = vector.multi_reduction <add>, %35, %cst_20 [0] : vector<32x256xf32> to vector<256xf32>
    %37 = vector.shape_cast %36 : vector<256xf32> to vector<1x256xf32>
    %cst_21 = arith.constant 0.176776692 : f32
    %38 = vector.broadcast %cst_21 : f32 to vector<1x256xf32>
    %39 = arith.divf %38, %37 : vector<1x256xf32>
    %40 = vector.broadcast %39 : vector<1x256xf32> to vector<32x256xf32>
    %41 = arith.mulf %35, %40 : vector<32x256xf32>
    %c64_22 = arith.constant 64 : index
    %c0_23 = arith.constant 0 : index
    %42 = vector.load %arg7[%c64_22, %c0_23] : memref<384x256xf32, #tpu.memory_space<vmem>>, vector<32x256xf32>
    tpu.vector_store %arg7[%c64_22, %c0_23], %41 {strides = array<i32>} : memref<384x256xf32, #tpu.memory_space<vmem>>, vector<32x256xf32>,
    %c96 = arith.constant 96 : index
    %c0_24 = arith.constant 0 : index
    %43 = vector.load %arg7[%c96, %c0_24] : memref<384x256xf32, #tpu.memory_space<vmem>>, vector<32x256xf32>
    %cst_25 = arith.constant dense<0xFF800000> : vector<256xf32>
    %44 = vector.multi_reduction <maximumf>, %43, %cst_25 [0] : vector<32x256xf32> to vector<256xf32>
    %45 = vector.shape_cast %44 : vector<256xf32> to vector<1x256xf32>
    %46 = vector.broadcast %45 : vector<1x256xf32> to vector<32x256xf32>
    %47 = arith.subf %43, %46 : vector<32x256xf32>
    %48 = math.exp %47 : vector<32x256xf32>
    %cst_26 = arith.constant dense<0.000000e+00> : vector<256xf32>
    %49 = vector.multi_reduction <add>, %48, %cst_26 [0] : vector<32x256xf32> to vector<256xf32>
    %50 = vector.shape_cast %49 : vector<256xf32> to vector<1x256xf32>
    %cst_27 = arith.constant 0.176776692 : f32
    %51 = vector.broadcast %cst_27 : f32 to vector<1x256xf32>
    %52 = arith.divf %51, %50 : vector<1x256xf32>
    %53 = vector.broadcast %52 : vector<1x256xf32> to vector<32x256xf32>
    %54 = arith.mulf %48, %53 : vector<32x256xf32>
    %c96_28 = arith.constant 96 : index
    %c0_29 = arith.constant 0 : index
    %55 = vector.load %arg7[%c96_28, %c0_29] : memref<384x256xf32, #tpu.memory_space<vmem>>, vector<32x256xf32>
    tpu.vector_store %arg7[%c96_28, %c0_29], %54 {strides = array<i32>} : memref<384x256xf32, #tpu.memory_space<vmem>>, vector<32x256xf32>,
    %c128 = arith.constant 128 : index
    %c0_30 = arith.constant 0 : index
    %56 = vector.load %arg7[%c128, %c0_30] : memref<384x256xf32, #tpu.memory_space<vmem>>, vector<128x128xf32>
    %cst_31 = arith.constant dense<0xFF800000> : vector<128xf32>
    %57 = vector.multi_reduction <maximumf>, %56, %cst_31 [1] : vector<128x128xf32> to vector<128xf32>
    %58 = vector.shape_cast %57 : vector<128xf32> to vector<128x1xf32>
    %59 = vector.broadcast %58 : vector<128x1xf32> to vector<128x128xf32>
    %60 = arith.subf %56, %59 : vector<128x128xf32>
    %61 = math.exp %60 : vector<128x128xf32>
    %cst_32 = arith.constant dense<0.000000e+00> : vector<128xf32>
    %62 = vector.multi_reduction <add>, %61, %cst_32 [1] : vector<128x128xf32> to vector<128xf32>
    %63 = vector.shape_cast %62 : vector<128xf32> to vector<128x1xf32>
    %cst_33 = arith.constant 1.000000e+00 : f32
    %64 = vector.broadcast %cst_33 : f32 to vector<128x1xf32>
    %65 = arith.divf %64, %63 : vector<128x1xf32>
    %66 = vector.broadcast %65 : vector<128x1xf32> to vector<128x128xf32>
    %67 = arith.mulf %61, %66 : vector<128x128xf32>
    %c128_34 = arith.constant 128 : index
    %c0_35 = arith.constant 0 : index
    %68 = vector.load %arg7[%c128_34, %c0_35] : memref<384x256xf32, #tpu.memory_space<vmem>>, vector<128x128xf32>
    tpu.vector_store %arg7[%c128_34, %c0_35], %67 {strides = array<i32>} : memref<384x256xf32, #tpu.memory_space<vmem>>, vector<128x128xf32>,
    %c128_36 = arith.constant 128 : index
    %c128_37 = arith.constant 128 : index
    %69 = vector.load %arg7[%c128_36, %c128_37] : memref<384x256xf32, #tpu.memory_space<vmem>>, vector<128x128xf32>
    %cst_38 = arith.constant dense<0xFF800000> : vector<128xf32>
    %70 = vector.multi_reduction <maximumf>, %69, %cst_38 [1] : vector<128x128xf32> to vector<128xf32>
    %71 = vector.shape_cast %70 : vector<128xf32> to vector<128x1xf32>
    %72 = vector.broadcast %71 : vector<128x1xf32> to vector<128x128xf32>
    %73 = arith.subf %69, %72 : vector<128x128xf32>
    %74 = math.exp %73 : vector<128x128xf32>
    %cst_39 = arith.constant dense<0.000000e+00> : vector<128xf32>
    %75 = vector.multi_reduction <add>, %74, %cst_39 [1] : vector<128x128xf32> to vector<128xf32>
    %76 = vector.shape_cast %75 : vector<128xf32> to vector<128x1xf32>
    %cst_40 = arith.constant 1.000000e+00 : f32
    %77 = vector.broadcast %cst_40 : f32 to vector<128x1xf32>
    %78 = arith.divf %77, %76 : vector<128x1xf32>
    %79 = vector.broadcast %78 : vector<128x1xf32> to vector<128x128xf32>
    %80 = arith.mulf %74, %79 : vector<128x128xf32>
    %c128_41 = arith.constant 128 : index
    %c128_42 = arith.constant 128 : index
    %81 = vector.load %arg7[%c128_41, %c128_42] : memref<384x256xf32, #tpu.memory_space<vmem>>, vector<128x128xf32>
    tpu.vector_store %arg7[%c128_41, %c128_42], %80 {strides = array<i32>} : memref<384x256xf32, #tpu.memory_space<vmem>>, vector<128x128xf32>,
    %c0_43 = arith.constant 0 : index
    %c0_44 = arith.constant 0 : index
    %82 = vector.load %arg7[%c0_43, %c0_44] : memref<384x256xf32, #tpu.memory_space<vmem>>, vector<32x128xf32>
    %c128_45 = arith.constant 128 : index
    %c0_46 = arith.constant 0 : index
    %83 = vector.load %arg7[%c128_45, %c0_46] : memref<384x256xf32, #tpu.memory_space<vmem>>, vector<32x128xf32>
    %c256 = arith.constant 256 : index
    %c0_47 = arith.constant 0 : index
    %84 = vector.load %arg7[%c256, %c0_47] : memref<384x256xf32, #tpu.memory_space<vmem>>, vector<32x128xf32>
    %cst_48 = arith.constant dense<0.000000e+00> : vector<32x32xf32>
    %85 = tpu.matmul %84, %83, %cst_48 {dimension_numbers = #tpu.dot_dimension_numbers<[1], [1], [0], [0], [0, 0, 1, 0], [], []>} : vector<32x128xf32>, vector<32x128xf32>, vector<32x32xf32> -> vector<32x32xf32>
    %cst_49 = arith.constant dense<0.000000e+00> : vector<32x128xf32>
    %86 = tpu.matmul %85, %82, %cst_49 {dimension_numbers = #tpu.dot_dimension_numbers<[1], [0], [0], [1], [0, 0, 1, 1], [], []>} : vector<32x32xf32>, vector<32x128xf32>, vector<32x128xf32> -> vector<32x128xf32>
    %c0_50 = arith.constant 0 : index
    %c0_51 = arith.constant 0 : index
    %87 = vector.load %arg8[%c0_50, %c0_51] : memref<128x256xf32, #tpu.memory_space<vmem>>, vector<32x128xf32>
    tpu.vector_store %arg8[%c0_50, %c0_51], %86 {strides = array<i32>} : memref<128x256xf32, #tpu.memory_space<vmem>>, vector<32x128xf32>,
    %c32_52 = arith.constant 32 : index
    %c0_53 = arith.constant 0 : index
    %88 = vector.load %arg7[%c32_52, %c0_53] : memref<384x256xf32, #tpu.memory_space<vmem>>, vector<32x128xf32>
    %c160 = arith.constant 160 : index
    %c0_54 = arith.constant 0 : index
    %89 = vector.load %arg7[%c160, %c0_54] : memref<384x256xf32, #tpu.memory_space<vmem>>, vector<32x128xf32>
    %c288 = arith.constant 288 : index
    %c0_55 = arith.constant 0 : index
    %90 = vector.load %arg7[%c288, %c0_55] : memref<384x256xf32, #tpu.memory_space<vmem>>, vector<32x128xf32>
    %cst_56 = arith.constant dense<0.000000e+00> : vector<32x32xf32>
    %91 = tpu.matmul %90, %89, %cst_56 {dimension_numbers = #tpu.dot_dimension_numbers<[1], [1], [0], [0], [0, 0, 1, 0], [], []>} : vector<32x128xf32>, vector<32x128xf32>, vector<32x32xf32> -> vector<32x32xf32>
    %cst_57 = arith.constant dense<0.000000e+00> : vector<32x128xf32>
    %92 = tpu.matmul %91, %88, %cst_57 {dimension_numbers = #tpu.dot_dimension_numbers<[1], [0], [0], [1], [0, 0, 1, 1], [], []>} : vector<32x32xf32>, vector<32x128xf32>, vector<32x128xf32> -> vector<32x128xf32>
    %c32_58 = arith.constant 32 : index
    %c0_59 = arith.constant 0 : index
    %93 = vector.load %arg8[%c32_58, %c0_59] : memref<128x256xf32, #tpu.memory_space<vmem>>, vector<32x128xf32>
    tpu.vector_store %arg8[%c32_58, %c0_59], %92 {strides = array<i32>} : memref<128x256xf32, #tpu.memory_space<vmem>>, vector<32x128xf32>,
    %c64_60 = arith.constant 64 : index
    %c0_61 = arith.constant 0 : index
    %94 = vector.load %arg7[%c64_60, %c0_61] : memref<384x256xf32, #tpu.memory_space<vmem>>, vector<32x128xf32>
    %c192 = arith.constant 192 : index
    %c0_62 = arith.constant 0 : index
    %95 = vector.load %arg7[%c192, %c0_62] : memref<384x256xf32, #tpu.memory_space<vmem>>, vector<32x128xf32>
    %c320 = arith.constant 320 : index
    %c0_63 = arith.constant 0 : index
    %96 = vector.load %arg7[%c320, %c0_63] : memref<384x256xf32, #tpu.memory_space<vmem>>, vector<32x128xf32>
    %cst_64 = arith.constant dense<0.000000e+00> : vector<32x32xf32>
    %97 = tpu.matmul %96, %95, %cst_64 {dimension_numbers = #tpu.dot_dimension_numbers<[1], [1], [0], [0], [0, 0, 1, 0], [], []>} : vector<32x128xf32>, vector<32x128xf32>, vector<32x32xf32> -> vector<32x32xf32>
    %cst_65 = arith.constant dense<0.000000e+00> : vector<32x128xf32>
    %98 = tpu.matmul %97, %94, %cst_65 {dimension_numbers = #tpu.dot_dimension_numbers<[1], [0], [0], [1], [0, 0, 1, 1], [], []>} : vector<32x32xf32>, vector<32x128xf32>, vector<32x128xf32> -> vector<32x128xf32>
    %c64_66 = arith.constant 64 : index
    %c0_67 = arith.constant 0 : index
    %99 = vector.load %arg8[%c64_66, %c0_67] : memref<128x256xf32, #tpu.memory_space<vmem>>, vector<32x128xf32>
    tpu.vector_store %arg8[%c64_66, %c0_67], %98 {strides = array<i32>} : memref<128x256xf32, #tpu.memory_space<vmem>>, vector<32x128xf32>,
    %c96_68 = arith.constant 96 : index
    %c0_69 = arith.constant 0 : index
    %100 = vector.load %arg7[%c96_68, %c0_69] : memref<384x256xf32, #tpu.memory_space<vmem>>, vector<32x128xf32>
    %c224 = arith.constant 224 : index
    %c0_70 = arith.constant 0 : index
    %101 = vector.load %arg7[%c224, %c0_70] : memref<384x256xf32, #tpu.memory_space<vmem>>, vector<32x128xf32>
    %c352 = arith.constant 352 : index
    %c0_71 = arith.constant 0 : index
    %102 = vector.load %arg7[%c352, %c0_71] : memref<384x256xf32, #tpu.memory_space<vmem>>, vector<32x128xf32>
    %cst_72 = arith.constant dense<0.000000e+00> : vector<32x32xf32>
    %103 = tpu.matmul %102, %101, %cst_72 {dimension_numbers = #tpu.dot_dimension_numbers<[1], [1], [0], [0], [0, 0, 1, 0], [], []>} : vector<32x128xf32>, vector<32x128xf32>, vector<32x32xf32> -> vector<32x32xf32>
    %cst_73 = arith.constant dense<0.000000e+00> : vector<32x128xf32>
    %104 = tpu.matmul %103, %100, %cst_73 {dimension_numbers = #tpu.dot_dimension_numbers<[1], [0], [0], [1], [0, 0, 1, 1], [], []>} : vector<32x32xf32>, vector<32x128xf32>, vector<32x128xf32> -> vector<32x128xf32>
    %c96_74 = arith.constant 96 : index
    %c0_75 = arith.constant 0 : index
    %105 = vector.load %arg8[%c96_74, %c0_75] : memref<128x256xf32, #tpu.memory_space<vmem>>, vector<32x128xf32>
    tpu.vector_store %arg8[%c96_74, %c0_75], %104 {strides = array<i32>} : memref<128x256xf32, #tpu.memory_space<vmem>>, vector<32x128xf32>,
    %c0_76 = arith.constant 0 : index
    %c128_77 = arith.constant 128 : index
    %106 = vector.load %arg7[%c0_76, %c128_77] : memref<384x256xf32, #tpu.memory_space<vmem>>, vector<32x128xf32>
    %c128_78 = arith.constant 128 : index
    %c128_79 = arith.constant 128 : index
    %107 = vector.load %arg7[%c128_78, %c128_79] : memref<384x256xf32, #tpu.memory_space<vmem>>, vector<32x128xf32>
    %c256_80 = arith.constant 256 : index
    %c128_81 = arith.constant 128 : index
    %108 = vector.load %arg7[%c256_80, %c128_81] : memref<384x256xf32, #tpu.memory_space<vmem>>, vector<32x128xf32>
    %cst_82 = arith.constant dense<0.000000e+00> : vector<32x32xf32>
    %109 = tpu.matmul %108, %107, %cst_82 {dimension_numbers = #tpu.dot_dimension_numbers<[1], [1], [0], [0], [0, 0, 1, 0], [], []>} : vector<32x128xf32>, vector<32x128xf32>, vector<32x32xf32> -> vector<32x32xf32>
    %cst_83 = arith.constant dense<0.000000e+00> : vector<32x128xf32>
    %110 = tpu.matmul %109, %106, %cst_83 {dimension_numbers = #tpu.dot_dimension_numbers<[1], [0], [0], [1], [0, 0, 1, 1], [], []>} : vector<32x32xf32>, vector<32x128xf32>, vector<32x128xf32> -> vector<32x128xf32>
    %c0_84 = arith.constant 0 : index
    %c128_85 = arith.constant 128 : index
    %111 = vector.load %arg8[%c0_84, %c128_85] : memref<128x256xf32, #tpu.memory_space<vmem>>, vector<32x128xf32>
    tpu.vector_store %arg8[%c0_84, %c128_85], %110 {strides = array<i32>} : memref<128x256xf32, #tpu.memory_space<vmem>>, vector<32x128xf32>,
    %c32_86 = arith.constant 32 : index
    %c128_87 = arith.constant 128 : index
    %112 = vector.load %arg7[%c32_86, %c128_87] : memref<384x256xf32, #tpu.memory_space<vmem>>, vector<32x128xf32>
    %c160_88 = arith.constant 160 : index
    %c128_89 = arith.constant 128 : index
    %113 = vector.load %arg7[%c160_88, %c128_89] : memref<384x256xf32, #tpu.memory_space<vmem>>, vector<32x128xf32>
    %c288_90 = arith.constant 288 : index
    %c128_91 = arith.constant 128 : index
    %114 = vector.load %arg7[%c288_90, %c128_91] : memref<384x256xf32, #tpu.memory_space<vmem>>, vector<32x128xf32>
    %cst_92 = arith.constant dense<0.000000e+00> : vector<32x32xf32>
    %115 = tpu.matmul %114, %113, %cst_92 {dimension_numbers = #tpu.dot_dimension_numbers<[1], [1], [0], [0], [0, 0, 1, 0], [], []>} : vector<32x128xf32>, vector<32x128xf32>, vector<32x32xf32> -> vector<32x32xf32>
    %cst_93 = arith.constant dense<0.000000e+00> : vector<32x128xf32>
    %116 = tpu.matmul %115, %112, %cst_93 {dimension_numbers = #tpu.dot_dimension_numbers<[1], [0], [0], [1], [0, 0, 1, 1], [], []>} : vector<32x32xf32>, vector<32x128xf32>, vector<32x128xf32> -> vector<32x128xf32>
    %c32_94 = arith.constant 32 : index
    %c128_95 = arith.constant 128 : index
    %117 = vector.load %arg8[%c32_94, %c128_95] : memref<128x256xf32, #tpu.memory_space<vmem>>, vector<32x128xf32>
    tpu.vector_store %arg8[%c32_94, %c128_95], %116 {strides = array<i32>} : memref<128x256xf32, #tpu.memory_space<vmem>>, vector<32x128xf32>,
    %c64_96 = arith.constant 64 : index
    %c128_97 = arith.constant 128 : index
    %118 = vector.load %arg7[%c64_96, %c128_97] : memref<384x256xf32, #tpu.memory_space<vmem>>, vector<32x128xf32>
    %c192_98 = arith.constant 192 : index
    %c128_99 = arith.constant 128 : index
    %119 = vector.load %arg7[%c192_98, %c128_99] : memref<384x256xf32, #tpu.memory_space<vmem>>, vector<32x128xf32>
    %c320_100 = arith.constant 320 : index
    %c128_101 = arith.constant 128 : index
    %120 = vector.load %arg7[%c320_100, %c128_101] : memref<384x256xf32, #tpu.memory_space<vmem>>, vector<32x128xf32>
    %cst_102 = arith.constant dense<0.000000e+00> : vector<32x32xf32>
    %121 = tpu.matmul %120, %119, %cst_102 {dimension_numbers = #tpu.dot_dimension_numbers<[1], [1], [0], [0], [0, 0, 1, 0], [], []>} : vector<32x128xf32>, vector<32x128xf32>, vector<32x32xf32> -> vector<32x32xf32>
    %cst_103 = arith.constant dense<0.000000e+00> : vector<32x128xf32>
    %122 = tpu.matmul %121, %118, %cst_103 {dimension_numbers = #tpu.dot_dimension_numbers<[1], [0], [0], [1], [0, 0, 1, 1], [], []>} : vector<32x32xf32>, vector<32x128xf32>, vector<32x128xf32> -> vector<32x128xf32>
    %c64_104 = arith.constant 64 : index
    %c128_105 = arith.constant 128 : index
    %123 = vector.load %arg8[%c64_104, %c128_105] : memref<128x256xf32, #tpu.memory_space<vmem>>, vector<32x128xf32>
    tpu.vector_store %arg8[%c64_104, %c128_105], %122 {strides = array<i32>} : memref<128x256xf32, #tpu.memory_space<vmem>>, vector<32x128xf32>,
    %c96_106 = arith.constant 96 : index
    %c128_107 = arith.constant 128 : index
    %124 = vector.load %arg7[%c96_106, %c128_107] : memref<384x256xf32, #tpu.memory_space<vmem>>, vector<32x128xf32>
    %c224_108 = arith.constant 224 : index
    %c128_109 = arith.constant 128 : index
    %125 = vector.load %arg7[%c224_108, %c128_109] : memref<384x256xf32, #tpu.memory_space<vmem>>, vector<32x128xf32>
    %c352_110 = arith.constant 352 : index
    %c128_111 = arith.constant 128 : index
    %126 = vector.load %arg7[%c352_110, %c128_111] : memref<384x256xf32, #tpu.memory_space<vmem>>, vector<32x128xf32>
    %cst_112 = arith.constant dense<0.000000e+00> : vector<32x32xf32>
    %127 = tpu.matmul %126, %125, %cst_112 {dimension_numbers = #tpu.dot_dimension_numbers<[1], [1], [0], [0], [0, 0, 1, 0], [], []>} : vector<32x128xf32>, vector<32x128xf32>, vector<32x32xf32> -> vector<32x32xf32>
    %cst_113 = arith.constant dense<0.000000e+00> : vector<32x128xf32>
    %128 = tpu.matmul %127, %124, %cst_113 {dimension_numbers = #tpu.dot_dimension_numbers<[1], [0], [0], [1], [0, 0, 1, 1], [], []>} : vector<32x32xf32>, vector<32x128xf32>, vector<32x128xf32> -> vector<32x128xf32>
    %c96_114 = arith.constant 96 : index
    %c128_115 = arith.constant 128 : index
    %129 = vector.load %arg8[%c96_114, %c128_115] : memref<128x256xf32, #tpu.memory_space<vmem>>, vector<32x128xf32>
    tpu.vector_store %arg8[%c96_114, %c128_115], %128 {strides = array<i32>} : memref<128x256xf32, #tpu.memory_space<vmem>>, vector<32x128xf32>,
    %c0_116 = arith.constant 0 : index
    %c0_117 = arith.constant 0 : index
    %130 = vector.load %arg3[%c0_116, %c0_117] : memref<16x128xf32, #tpu.memory_space<vmem>>, vector<16x128xf32>
    %c0_118 = arith.constant 0 : index
    %c0_119 = arith.constant 0 : index
    %131 = vector.load %arg8[%c0_118, %c0_119] : memref<128x256xf32, #tpu.memory_space<vmem>>, vector<128x256xf32>
    %cst_120 = arith.constant dense<0.000000e+00> : vector<16x256xf32>
    %132 = tpu.matmul %130, %131, %cst_120 {dimension_numbers = #tpu.dot_dimension_numbers<[1], [0], [0], [1], [0, 0, 1, 1], [], []>} : vector<16x128xf32>, vector<128x256xf32>, vector<16x256xf32> -> vector<16x256xf32>
    %c0_121 = arith.constant 0 : index
    %c0_122 = arith.constant 0 : index
    %133 = vector.load %arg4[%c0_121, %c0_122] : memref<16x1xf32, #tpu.memory_space<vmem>>, vector<16x1xf32>
    %134 = vector.broadcast %133 : vector<16x1xf32> to vector<16x256xf32>
    %135 = arith.addf %132, %134 : vector<16x256xf32>
    %cst_123 = arith.constant dense<0.000000e+00> : vector<256xf32>
    %136 = vector.multi_reduction <add>, %135, %cst_123 [0] : vector<16x256xf32> to vector<256xf32>
    %137 = vector.shape_cast %136 : vector<256xf32> to vector<1x256xf32>
    %cst_124 = arith.constant 1.600000e+01 : f32
    %138 = vector.broadcast %cst_124 : f32 to vector<1x256xf32>
    %139 = arith.divf %137, %138 : vector<1x256xf32>
    %140 = vector.broadcast %139 : vector<1x256xf32> to vector<16x256xf32>
    %141 = arith.subf %135, %140 : vector<16x256xf32>
    %142 = arith.mulf %141, %141 : vector<16x256xf32>
    %cst_125 = arith.constant dense<0.000000e+00> : vector<256xf32>
    %143 = vector.multi_reduction <add>, %142, %cst_125 [0] : vector<16x256xf32> to vector<256xf32>
    %144 = vector.shape_cast %143 : vector<256xf32> to vector<1x256xf32>
    %cst_126 = arith.constant 1.600000e+01 : f32
    %145 = vector.broadcast %cst_126 : f32 to vector<1x256xf32>
    %146 = arith.divf %144, %145 : vector<1x256xf32>
    %147 = vector.broadcast %139 : vector<1x256xf32> to vector<16x256xf32>
    %148 = arith.subf %135, %147 : vector<16x256xf32>
    %cst_127 = arith.constant 9.99999974E-6 : f32
    %149 = vector.broadcast %cst_127 : f32 to vector<1x256xf32>
    %150 = arith.addf %146, %149 : vector<1x256xf32>
    %151 = math.rsqrt %150 : vector<1x256xf32>
    %152 = vector.broadcast %151 : vector<1x256xf32> to vector<16x256xf32>
    %153 = arith.mulf %148, %152 : vector<16x256xf32>
    %c0_128 = arith.constant 0 : index
    %c0_129 = arith.constant 0 : index
    %154 = vector.load %arg5[%c0_128, %c0_129] : memref<16x1xf32, #tpu.memory_space<vmem>>, vector<16x1xf32>
    %155 = vector.broadcast %154 : vector<16x1xf32> to vector<16x256xf32>
    %156 = arith.mulf %153, %155 : vector<16x256xf32>
    %c0_130 = arith.constant 0 : index
    %c0_131 = arith.constant 0 : index
    %157 = vector.load %arg6[%c0_130, %c0_131] : memref<16x256xf32, #tpu.memory_space<vmem>>, vector<16x256xf32>
    tpu.vector_store %arg6[%c0_130, %c0_131], %156 {strides = array<i32>} : memref<16x256xf32, #tpu.memory_space<vmem>>, vector<16x256xf32>,
    return
  }
  func.func @transform_0(%arg0: i32) -> (i32, i32) {
    %c0_i32 = arith.constant 0 : i32
    %c0_i32_0 = arith.constant 0 : i32
    return %c0_i32, %arg0 : i32, i32
  }
  func.func @transform_1(%arg0: i32) -> (i32, i32) {
    %c0_i32 = arith.constant 0 : i32
    %c0_i32_0 = arith.constant 0 : i32
    %c0_i32_1 = arith.constant 0 : i32
    return %c0_i32, %c0_i32_0 : i32, i32
  }
  func.func @transform_2(%arg0: i32) -> (i32, i32) {
    %c0_i32 = arith.constant 0 : i32
    %c0_i32_0 = arith.constant 0 : i32
    %c0_i32_1 = arith.constant 0 : i32
    return %c0_i32, %c0_i32_0 : i32, i32
  }
  func.func @transform_3(%arg0: i32) -> (i32, i32) {
    %c0_i32 = arith.constant 0 : i32
    %c0_i32_0 = arith.constant 0 : i32
    %c0_i32_1 = arith.constant 0 : i32
    return %c0_i32, %c0_i32_0 : i32, i32
  }
  func.func @transform_4(%arg0: i32) -> (i32, i32) {
    %c0_i32 = arith.constant 0 : i32
    %c0_i32_0 = arith.constant 0 : i32
    %c0_i32_1 = arith.constant 0 : i32
    return %c0_i32, %c0_i32_0 : i32, i32
  }
  func.func @transform_5(%arg0: i32) -> (i32, i32) {
    %c0_i32 = arith.constant 0 : i32
    %c0_i32_0 = arith.constant 0 : i32
    return %c0_i32, %arg0 : i32, i32
  }
}

</mosaic_0001>

<bundles_post_ra>
// kernel: tpu_custom_call.1
= control target key start
LH: loop header
LB: loop body
LE: loop exit
PB: predicated region body
PF: predicated region fallthrough
CT: control target
= control target key end

     0   :  { %v4949_v4 = vmov 0.0   ;;  %vm73_vm0 = vcmask 130048   ;;  %s4943_s0 = inlined_call_operand.vmem [shape: f32[16,256], index: 0, kind: input, shape index: {}]   ;;  %s4944_s1 = inlined_call_operand.vmem [shape: f32[384,16], index: 1, kind: input, shape index: {}]   ;;  %s4945_s2 = inlined_call_operand.vmem [shape: f32[16,128], index: 2, kind: input, shape index: {}]   ;;  %s4946_s3 = inlined_call_operand.vmem [shape: f32[16,1], index: 3, kind: input, shape index: {}]   ;;  %s4947_s4 = inlined_call_operand.vmem [shape: f32[16,1], index: 4, kind: input, shape index: {}]   ;;  %s4948_s5 = inlined_call_operand.hbm [shape: f32[16,256], index: 5, kind: output, shape index: {}]  }
   0x1   :  { %v24_v0 = vld [vmem:[%s4943_s0 + $0x18] sm:$0xff]  ;;  %v23_v1 = vld [vmem:[%s4943_s0 + $0x10] sm:$0xff]  ;;  %v22_v2 = vld [vmem:[%s4943_s0 + $0x8] sm:$0xff]  ;;  %282 = vmatprep.mubr.f32.mxu0 %v4949_v4 }
   0x2   :  { %246 = vmatprep.subr.mxu0 %v24_v0  ;;  %v21_v3 = vld [vmem:[%s4943_s0] sm:$0xff]  ;;  %v26_v6 = vld [vmem:[%s4944_s1 + $0x8] sm:$0xff] }
   0x3   :  { %247 = vmatpush1.msra.mxu0 %v23_v1  ;;  %v25_v5 = vld [vmem:[%s4944_s1] sm:$0xff] }
   0x4   :  { %248 = vmatprep.subr.mxu0 %v22_v2 }
   0x5   :  { %249 = vmatpush1.msra.mxu0 %v21_v3 }
   0x6   :  { %3196 = vmatmul.mubr.msk.f32.vlgmr.msra.gmra.mxu0 %vm73_vm0, %v25_v5 }
   0x7   :  { %288 = vmatprep.mubr.f32.mxu0 %v4949_v4 }
   0x8   :  { %10 = vsyncpa [#allocation5], 0  ;;  %v27_v7 = vld [vmem:[%s4944_s1 + $0x10] sm:$0xff]  ;;  %v28_v8 = vld [vmem:[%s4944_s1 + $0x18] sm:$0xff]  ;;  %vm1500_vm1 = vcmask 261120  }
   0x9   :  { %v29_v9 = vld [vmem:[%s4944_s1 + $0x20] sm:$0xff]  ;;  %v30_v10 = vld [vmem:[%s4944_s1 + $0x28] sm:$0xff]  ;;  %v31_v11 = vld [vmem:[%s4944_s1 + $0x30] sm:$0xff] }
   0xa   :  { %3197 = vmatmul.mubr.msk.f32.gmra.mxu0 %vm73_vm0, %v26_v6  ;;  %v32_v12 = vld [vmem:[%s4944_s1 + $0x38] sm:$0xff]  ;;  %v33_v13 = vld [vmem:[%s4944_s1 + $0x40] sm:$0xff]  ;;  %v34_v14 = vld [vmem:[%s4944_s1 + $0x48] sm:$0xff] }
   0xb   :  { %294 = vmatprep.mubr.f32.mxu0 %v4949_v4  ;;  %v35_v15 = vld [vmem:[%s4944_s1 + $0x50] sm:$0xff]  ;;  %v36_v16 = vld [vmem:[%s4944_s1 + $0x58] sm:$0xff]  ;;  %v37_v17 = vld [vmem:[%s4944_s1 + $0x60] sm:$0xff] }
   0xc   :  { %v38_v18 = vld [vmem:[%s4944_s1 + $0x68] sm:$0xff]  ;;  %v39_v19 = vld [vmem:[%s4944_s1 + $0x70] sm:$0xff]  ;;  %v40_v20 = vld [vmem:[%s4944_s1 + $0x78] sm:$0xff] }
   0xd   :  { %v41_v21 = vld [vmem:[%s4944_s1 + $0x80] sm:$0xff]  ;;  %v42_v22 = vld [vmem:[%s4944_s1 + $0x88] sm:$0xff]  ;;  %v43_v23 = vld [vmem:[%s4944_s1 + $0x90] sm:$0xff] }
   0xe   :  { %3198 = vmatmul.mubr.msk.f32.gmra.mxu0 %vm73_vm0, %v27_v7  ;;  %v44_v24 = vld [vmem:[%s4944_s1 + $0x98] sm:$0xff]  ;;  %v45_v25 = vld [vmem:[%s4944_s1 + $0xa0] sm:$0xff]  ;;  %v46_v26 = vld [vmem:[%s4944_s1 + $0xa8] sm:$0xff] }
   0xf   :  { %300 = vmatprep.mubr.f32.mxu0 %v4949_v4  ;;  %v47_v27 = vld [vmem:[%s4944_s1 + $0xb0] sm:$0xff]  ;;  %v48_v28 = vld [vmem:[%s4944_s1 + $0xb8] sm:$0xff]  ;;  %v49_v29 = vld [vmem:[%s4944_s1 + $0xc0] sm:$0xff] }
  0x10   :  { %v50_v30 = vld [vmem:[%s4944_s1 + $0xc8] sm:$0xff]  ;;  %v51_v31 = vld [vmem:[%s4944_s1 + $0xd0] sm:$0xff]  ;;  %v52_v32 = vld [vmem:[%s4944_s1 + $0xd8] sm:$0xff] }
  0x11   :  { %v53_v33 = vld [vmem:[%s4944_s1 + $0xe0] sm:$0xff]  ;;  %v54_v36 = vld [vmem:[%s4944_s1 + $0xe8] sm:$0xff]  ;;  %v55_v39 = vld [vmem:[%s4944_s1 + $0xf0] sm:$0xff] }
  0x12   :  { %3199 = vmatmul.mubr.msk.f32.gmra.mxu0 %vm73_vm0, %v28_v8  ;;  %v56_v43 = vld [vmem:[%s4944_s1 + $0xf8] sm:$0xff]  ;;  %v57_v48 = vld [vmem:[%s4944_s1 + $0x100] sm:$0xff] }
  0x13   :  { %306 = vmatprep.mubr.f32.mxu0 %v4949_v4 }
  0x16   :  { %3200 = vmatmul.mubr.msk.f32.gmra.mxu0 %vm73_vm0, %v29_v9 }
  0x17   :  { %312 = vmatprep.mubr.f32.mxu0 %v4949_v4 }
  0x1a   :  { %3201 = vmatmul.mubr.msk.f32.gmra.mxu0 %vm73_vm0, %v30_v10 }
  0x1b   :  { %318 = vmatprep.mubr.f32.mxu0 %v4949_v4 }
  0x1e   :  { %3202 = vmatmul.mubr.msk.f32.gmra.mxu0 %vm73_vm0, %v31_v11 }
  0x1f   :  { %324 = vmatprep.mubr.f32.mxu0 %v4949_v4 }
  0x22   :  { %3203 = vmatmul.mubr.msk.f32.gmra.mxu0 %vm73_vm0, %v32_v12 }
  0x23   :  { %330 = vmatprep.mubr.f32.mxu0 %v4949_v4 }
  0x26   :  { %3204 = vmatmul.mubr.msk.f32.gmra.mxu0 %vm73_vm0, %v33_v13 }
  0x27   :  { %336 = vmatprep.mubr.f32.mxu0 %v4949_v4 }
  0x2a   :  { %3205 = vmatmul.mubr.msk.f32.gmra.mxu0 %vm73_vm0, %v34_v14 }
  0x2b   :  { %342 = vmatprep.mubr.f32.mxu0 %v4949_v4 }
  0x2e   :  { %3206 = vmatmul.mubr.msk.f32.gmra.mxu0 %vm73_vm0, %v35_v15 }
  0x2f   :  { %348 = vmatprep.mubr.f32.mxu0 %v4949_v4 }
  0x32   :  { %3207 = vmatmul.mubr.msk.f32.gmra.mxu0 %vm73_vm0, %v36_v16 }
  0x33   :  { %354 = vmatprep.mubr.f32.mxu0 %v4949_v4 }
  0x36   :  { %3208 = vmatmul.mubr.msk.f32.gmra.mxu0 %vm73_vm0, %v37_v17 }
  0x37   :  { %360 = vmatprep.mubr.f32.mxu0 %v4949_v4 }
  0x3a   :  { %3209 = vmatmul.mubr.msk.f32.gmra.mxu0 %vm73_vm0, %v38_v18 }
  0x3b   :  { %366 = vmatprep.mubr.f32.mxu0 %v4949_v4 }
  0x3e   :  { %3210 = vmatmul.mubr.msk.f32.gmra.mxu0 %vm73_vm0, %v39_v19 }
  0x3f   :  { %372 = vmatprep.mubr.f32.mxu0 %v4949_v4 }
  0x42   :  { %3211 = vmatmul.mubr.msk.f32.gmra.mxu0 %vm73_vm0, %v40_v20 }
  0x43   :  { %378 = vmatprep.mubr.f32.mxu0 %v4949_v4 }
  0x46   :  { %3212 = vmatmul.mubr.msk.f32.gmra.mxu0 %vm73_vm0, %v41_v21 }
  0x47   :  { %384 = vmatprep.mubr.f32.mxu0 %v4949_v4 }
  0x4a   :  { %3213 = vmatmul.mubr.msk.f32.gmra.mxu0 %vm73_vm0, %v42_v22 }
  0x4b   :  { %390 = vmatprep.mubr.f32.mxu0 %v4949_v4 }
  0x4e   :  { %3214 = vmatmul.mubr.msk.f32.gmra.mxu0 %vm73_vm0, %v43_v23 }
  0x4f   :  { %396 = vmatprep.mubr.f32.mxu0 %v4949_v4 }
  0x52   :  { %3215 = vmatmul.mubr.msk.f32.gmra.mxu0 %vm73_vm0, %v44_v24 }
  0x53   :  { %402 = vmatprep.mubr.f32.mxu0 %v4949_v4 }
  0x56   :  { %3216 = vmatmul.mubr.msk.f32.gmra.mxu0 %vm73_vm0, %v45_v25 }
  0x57   :  { %408 = vmatprep.mubr.f32.mxu0 %v4949_v4 }
  0x5a   :  { %3217 = vmatmul.mubr.msk.f32.gmra.mxu0 %vm73_vm0, %v46_v26 }
  0x5b   :  { %414 = vmatprep.mubr.f32.mxu0 %v4949_v4 }
  0x5e   :  { %3218 = vmatmul.mubr.msk.f32.gmra.mxu0 %vm73_vm0, %v47_v27 }
  0x5f   :  { %420 = vmatprep.mubr.f32.mxu0 %v4949_v4 }
  0x62   :  { %3219 = vmatmul.mubr.msk.f32.gmra.mxu0 %vm73_vm0, %v48_v28 }
  0x63   :  { %426 = vmatprep.mubr.f32.mxu0 %v4949_v4 }
  0x66   :  { %3220 = vmatmul.mubr.msk.f32.gmra.mxu0 %vm73_vm0, %v49_v29 }
  0x67   :  { %432 = vmatprep.mubr.f32.mxu0 %v4949_v4 }
  0x6a   :  { %3221 = vmatmul.mubr.msk.f32.gmra.mxu0 %vm73_vm0, %v50_v30 }
  0x6b   :  { %438 = vmatprep.mubr.f32.mxu0 %v4949_v4 }
  0x6e   :  { %3222 = vmatmul.mubr.msk.f32.gmra.mxu0 %vm73_vm0, %v51_v31 }
  0x6f   :  { %444 = vmatprep.mubr.f32.mxu0 %v4949_v4 }
  0x72   :  { %3223 = vmatmul.mubr.msk.f32.gmra.mxu0 %vm73_vm0, %v52_v32 }
  0x73   :  { %450 = vmatprep.mubr.f32.mxu0 %v4949_v4 }
  0x76   :  { %3224 = vmatmul.mubr.msk.f32.gmra.mxu0 %vm73_vm0, %v53_v33 }
  0x77   :  { %456 = vmatprep.mubr.f32.mxu0 %v4949_v4 }
  0x7a   :  { %3225 = vmatmul.mubr.msk.f32.gmra.mxu0 %vm73_vm0, %v54_v36 }
  0x7b   :  { %462 = vmatprep.mubr.f32.mxu0 %v4949_v4 }
  0x7e   :  { %3226 = vmatmul.mubr.msk.f32.gmra.mxu0 %vm73_vm0, %v55_v39 }
  0x7f   :  { %468 = vmatprep.mubr.f32.mxu0 %v4949_v4 }
  0x82   :  { %3227 = vmatmul.mubr.msk.f32.gmra.mxu0 %vm73_vm0, %v56_v43 }
  0x83   :  { %474 = vmatprep.mubr.f32.mxu0 %v4949_v4 }
  0x86   :  { %3228 = vmatmul.mubr.msk.f32.gmra.mxu0 %vm73_vm0, %v57_v48 }
  0x87   :  { %480 = vmatprep.mubr.f32.mxu0 %v4949_v4 }
  0xc6   :  { %v284_v34 = vpop.f32.mrf.mxu0 }
  0xc8   :  { %v4061_v35 = vpop.f32.mrf.mxu0 }
  0xca   :  { %v290_v37 = vpop.f32.mrf.mxu0 }
  0xcc   :  { %v4068_v38 = vpop.f32.mrf.mxu0 }
  0xce   :  { %v296_v40 = vpop.f32.mrf.mxu0 }
  0xcf   :  { %v675_v41 = vmax.f32 %v284_v34, %v296_v40 }
  0xd0   :  { %v4075_v42 = vpop.f32.mrf.mxu0 }
  0xd1   :  { %v684_v44 = vmax.f32 %v4061_v35, %v4075_v42 }
  0xd2   :  { %v302_v45 = vpop.f32.mrf.mxu0 }
  0xd3   :  { %v676_v46 = vmax.f32 %v290_v37, %v302_v45 }
  0xd4   :  { %v304_v47 = vpop.f32.mrf.mxu0 }
  0xd5   :  { %v677_v49 = vmax.f32 %v675_v41, %v676_v46  ;;  %v685_v50 = vmax.f32 %v4068_v38, %v304_v47 }
  0xd6   :  { %v4089_v51 = vpop.f32.mrf.mxu0 }
  0xd7   :  { %v678_v52 = vrot.slane %v677_v49, 4  ;;  %v686_v53 = vmax.f32 %v684_v44, %v685_v50 }
  0xd8   :  { %v4092_v54 = vpop.f32.mrf.mxu0 }
  0xd9   :  { %v679_v55 = vmax.f32 %v677_v49, %v678_v52  ;;  %v687_v56 = vrot.slane %v686_v53, 4 }
  0xda   :  { %v4095_v57 = vpop.f32.mrf.mxu0 }
  0xdb   :  { %v680_v58 = vrot.slane %v679_v55, 2  ;;  %v688_v59 = vmax.f32 %v686_v53, %v687_v56 }
  0xdc   :  { %v4097_v60 = vpop.f32.mrf.mxu0 }
  0xdd   :  { %v681_v61 = vmax.f32 %v679_v55, %v680_v58  ;;  %v689_v62 = vrot.slane %v688_v59, 2 }
  0xde   :  { %v4099_v63 = vpop.f32.mrf.mxu0 }
  0xdf   :  { %v682_v0 = vrot.slane %v681_v61, 1  ;;  %v690_v1 = vmax.f32 %v688_v59, %v689_v62  ;;  %v763_v2 = vmax.f32 %v4089_v51, %v4099_v63 }
  0xe0   :  { %v4103_v3 = vpop.f32.mrf.mxu0 }
  0xe1   :  { %v683_v5 = vmax.f32 %v681_v61, %v682_v0  ;;  %v691_v6 = vrot.slane %v690_v1, 1  ;;  %v772_v7 = vmax.f32 %v4092_v54, %v4103_v3 }
  0xe2   :  { %v4107_v8 = vpop.f32.mrf.mxu0 }
  0xe3   :  { %v693_v9 = vsub.f32 %v284_v34, %v683_v5  ;;  %v695_v10 = vsub.f32 %v290_v37, %v683_v5  ;;  %v697_v11 = vsub.f32 %v296_v40, %v683_v5  ;;  %v699_v12 = vsub.f32 %v302_v45, %v683_v5 }
  0xe4   :  { %v692_v13 = vmax.f32 %v690_v1, %v691_v6  ;;  %v764_v14 = vmax.f32 %v4095_v57, %v4107_v8  ;;  %v4111_v15 = vpop.f32.mrf.mxu0 }
  0xe5   :  { %v701_v16 = vmul.f32 1.442695, %v693_v9  ;;  %v705_v17 = vmul.f32 1.442695, %v695_v10  ;;  %v709_v18 = vmul.f32 1.442695, %v697_v11  ;;  %v773_v19 = vmax.f32 %v4097_v60, %v4111_v15 }
  0xe6   :  { %v713_v20 = vmul.f32 1.442695, %v699_v12  ;;  %v694_v21 = vsub.f32 %v4061_v35, %v692_v13  ;;  %v696_v22 = vsub.f32 %v4068_v38, %v692_v13  ;;  %v698_v23 = vsub.f32 %v4075_v42, %v692_v13  ;;  %v4118_v24 = vpop.f32.mrf.mxu0 }
  0xe7   :  { %3635 = vpow2.f32 %v701_v16  ;;  %v700_v25 = vsub.f32 %v304_v47, %v692_v13  ;;  %v765_v26 = vmax.f32 %v763_v2, %v764_v14  ;;  %v774_v27 = vmax.f32 %v772_v7, %v773_v19 }
  0xe8   :  { %3637 = vpow2.f32 %v705_v17  ;;  %v703_v28 = vmul.f32 1.442695, %v694_v21  ;;  %v707_v29 = vmul.f32 1.442695, %v696_v22  ;;  %v4120_v30 = vpop.f32.mrf.mxu0  ;;  %v711_v33 = vmul.f32 1.442695, %v698_v23 }
  0xe9   :  { %3639 = vpow2.f32 %v709_v18  ;;  %v766_v31 = vrot.slane %v765_v26, 4  ;;  %v775_v32 = vrot.slane %v774_v27, 4  ;;  %v715_v37 = vmul.f32 1.442695, %v700_v25 }
  0xea   :  { %3641 = vpow2.f32 %v713_v20  ;;  %v4122_v34 = vpop.f32.mrf.mxu0 }
  0xeb   :  { %3643 = vpow2.f32 %v703_v28  ;;  %v767_v35 = vmax.f32 %v765_v26, %v766_v31  ;;  %v776_v36 = vmax.f32 %v774_v27, %v775_v32 }
  0xec   :  { %3645 = vpow2.f32 %v707_v29  ;;  %v4124_v38 = vpop.f32.mrf.mxu0 }
  0xed   :  { %v768_v39 = vrot.slane %v767_v35, 2  ;;  %v777_v40 = vrot.slane %v776_v36, 2  ;;  %3647 = vpow2.f32 %v711_v33 }
  0xee   :  { %v4126_v41 = vpop.f32.mrf.mxu0  ;;  %3649 = vpow2.f32 %v715_v37 }
  0xef   :  { %v769_v42 = vmax.f32 %v767_v35, %v768_v39  ;;  %v778_v43 = vmax.f32 %v776_v36, %v777_v40  ;;  %v851_v44 = vmax.f32 %v4118_v24, %v4126_v41 }
  0xf0   :  { %v4130_v45 = vpop.f32.mrf.mxu0 }
  0xf1   :  { %v770_v46 = vrot.slane %v769_v42, 1  ;;  %v779_v47 = vrot.slane %v778_v43, 1  ;;  %v860_v48 = vmax.f32 %v4120_v30, %v4130_v45 }
  0xf2   :  { %v4134_v49 = vpop.f32.mrf.mxu0 }
  0xf3   :  { %v771_v50 = vmax.f32 %v769_v42, %v770_v46  ;;  %v780_v52 = vmax.f32 %v778_v43, %v779_v47  ;;  %v852_v53 = vmax.f32 %v4122_v34, %v4134_v49 }
  0xf4   :  { %v4138_v55 = vpop.eup %3635  ;;  %v4140_v56 = vpop.f32.mrf.mxu0 }
  0xf5   :  { %v4142_v58 = vpop.eup %3637  ;;  %v781_v59 = vsub.f32 %v4089_v51, %v771_v50  ;;  %v783_v61 = vsub.f32 %v4095_v57, %v771_v50  ;;  %v785_v62 = vsub.f32 %v4099_v63, %v771_v50  ;;  %v787_v0 = vsub.f32 %v4107_v8, %v771_v50 }
  0xf6   :  { %v4148_v1 = vpop.eup %3639  ;;  %v717_v2 = vadd.f32 %v4142_v58, %v4138_v55  ;;  %v782_v5 = vsub.f32 %v4092_v54, %v780_v52  ;;  %v784_v6 = vsub.f32 %v4097_v60, %v780_v52  ;;  %v786_v7 = vsub.f32 %v4103_v3, %v780_v52  ;;  %v4155_v9 = vpop.f32.mrf.mxu0 }
  0xf7   :  { %v4157_v51 = vpop.eup %3641  ;;  %v789_v57 = vmul.f32 1.442695, %v781_v59  ;;  %v793_v10 = vmul.f32 1.442695, %v783_v61  ;;  %v797_v63 = vmul.f32 1.442695, %v785_v62  ;;  %v788_v8 = vsub.f32 %v4111_v15, %v780_v52 }
  0xf8   :  { %v4160_v11 = vpop.eup %3643  ;;  %v718_v12 = vadd.f32 %v4148_v1, %v717_v2  ;;  %v801_v13 = vmul.f32 1.442695, %v787_v0  ;;  %v4163_v14 = vpop.f32.mrf.mxu0  ;;  %v791_v60 = vmul.f32 1.442695, %v782_v5  ;;  %v795_v3 = vmul.f32 1.442695, %v784_v6 }
  0xf9   :  { %v4165_v54 = vpop.eup %3645  ;;  %3651 = vpow2.f32 %v789_v57  ;;  %v853_v16 = vmax.f32 %v851_v44, %v852_v53  ;;  %v861_v15 = vmax.f32 %v4124_v38, %v4140_v56  ;;  %v799_v21 = vmul.f32 1.442695, %v786_v7 }
  0xfa   :  { %v719_v17 = vadd.f32 %v4157_v51, %v718_v12  ;;  %v726_v18 = vadd.f32 %v4165_v54, %v4160_v11  ;;  %3653 = vpow2.f32 %v793_v10  ;;  %v4172_v19 = vpop.f32.mrf.mxu0  ;;  %v4174_v20 = vpop.eup %3647  ;;  %v803_v29 = vmul.f32 1.442695, %v788_v8 }
  0xfb   :  { %3655 = vpow2.f32 %v797_v63  ;;  %v854_v22 = vrot.slane %v853_v16, 4  ;;  %v862_v26 = vmax.f32 %v860_v48, %v861_v15  ;;  %v4179_v28 = vpop.eup %3649 }
  0xfc   :  { %v720_v23 = vrot.slane %v719_v17, 4  ;;  %v727_v25 = vadd.f32 %v4174_v20, %v726_v18  ;;  %3657 = vpow2.f32 %v801_v13  ;;  %v4177_v27 = vpop.f32.mrf.mxu0 }
  0xfd   :  { %3659 = vpow2.f32 %v791_v60  ;;  %v855_v31 = vmax.f32 %v853_v16, %v854_v22  ;;  %v863_v35 = vrot.slane %v862_v26, 4 }
  0xfe   :  { %v721_v32 = vadd.f32 %v720_v23, %v719_v17  ;;  %v728_v33 = vadd.f32 %v4179_v28, %v727_v25  ;;  %3661 = vpow2.f32 %v795_v3  ;;  %v4182_v36 = vpop.f32.mrf.mxu0 }
  0xff   :  { %v856_v37 = vrot.slane %v855_v31, 2  ;;  %v939_v39 = vmax.f32 %v4155_v9, %v4182_v36  ;;  %3663 = vpow2.f32 %v799_v21  ;;  %v864_v42 = vmax.f32 %v862_v26, %v863_v35 }
 0x100   :  { %v729_v40 = vrot.slane %v728_v33, 4  ;;  %v4186_v43 = vpop.f32.mrf.mxu0  ;;  %v722_v44 = vrot.slane %v721_v32, 2  ;;  %3665 = vpow2.f32 %v803_v29 }
 0x101   :  { %v857_v46 = vmax.f32 %v855_v31, %v856_v37  ;;  %v948_v47 = vmax.f32 %v4163_v14, %v4186_v43  ;;  %v865_v50 = vrot.slane %v864_v42, 2 }
 0x102   :  { %v730_v48 = vadd.f32 %v729_v40, %v728_v33  ;;  %v4190_v52 = vpop.f32.mrf.mxu0  ;;  %v723_v53 = vadd.f32 %v722_v44, %v721_v32 }
 0x103   :  { %v858_v59 = vrot.slane %v857_v46, 1  ;;  %v940_v61 = vmax.f32 %v4172_v19, %v4190_v52  ;;  %v866_v62 = vmax.f32 %v864_v42, %v865_v50 }
 0x104   :  { %v4194_v0 = vpop.f32.mrf.mxu0  ;;  %v724_v2 = vrot.slane %v723_v53, 1  ;;  %v731_v5 = vrot.slane %v730_v48, 2 }
 0x105   :  { %v859_v6 = vmax.f32 %v857_v46, %v858_v59  ;;  %v941_v7 = vmax.f32 %v939_v39, %v940_v61  ;;  %v949_v57 = vmax.f32 %v4177_v27, %v4194_v0  ;;  %v867_v63 = vrot.slane %v866_v62, 1 }
 0x106   :  { %v4198_v10 = vpop.eup %3651  ;;  %v4200_v8 = vpop.f32.mrf.mxu0  ;;  %v725_v12 = vadd.f32 %v724_v2, %v723_v53  ;;  %v732_v13 = vadd.f32 %v731_v5, %v730_v48 }
 0x107   :  { %v4202_v60 = vpop.eup %3653  ;;  %v869_v3 = vsub.f32 %v4118_v24, %v859_v6  ;;  %v871_v16 = vsub.f32 %v4122_v34, %v859_v6  ;;  %v873_v17 = vsub.f32 %v4126_v41, %v859_v6  ;;  %v875_v18 = vsub.f32 %v4134_v49, %v859_v6 }
 0x108   :  { %v4208_v15 = vpop.eup %3655  ;;  %v805_v21 = vadd.f32 %v4202_v60, %v4198_v10  ;;  %v868_v22 = vmax.f32 %v866_v62, %v867_v63  ;;  %v942_v23 = vrot.slane %v941_v7, 4  ;;  %v950_v25 = vmax.f32 %v948_v47, %v949_v57  ;;  %v4212_v26 = vpop.f32.mrf.mxu0 }
 0x109   :  { %v4214_v29 = vpop.eup %3657  ;;  %v877_v31 = vmul.f32 1.442695, %v869_v3  ;;  %v881_v24 = vmul.f32 1.442695, %v871_v16  ;;  %v885_v32 = vmul.f32 1.442695, %v873_v17  ;;  %3667 = vrcp.f32 %v725_v12 }
 0x10a   :  { %v4216_v34 = vpop.eup %3659  ;;  %v806_v41 = vadd.f32 %v4208_v15, %v805_v21  ;;  %v889_v49 = vmul.f32 1.442695, %v875_v18  ;;  %v870_v33 = vsub.f32 %v4120_v30, %v868_v22  ;;  %v872_v35 = vsub.f32 %v4124_v38, %v868_v22  ;;  %v4221_v37 = vpop.f32.mrf.mxu0 }
 0x10b   :  { %v4223_v39 = vpop.eup %3661  ;;  %3669 = vpow2.f32 %v877_v31  ;;  %v874_v40 = vsub.f32 %v4130_v45, %v868_v22  ;;  %v876_v42 = vsub.f32 %v4140_v56, %v868_v22  ;;  %v943_v44 = vmax.f32 %v941_v7, %v942_v23  ;;  %1037 = vmax.xlane.f32.xlu1 %v4221_v37 }
 0x10c   :  { %v807_v46 = vadd.f32 %v4214_v29, %v806_v41  ;;  %v814_v47 = vadd.f32 %v4223_v39, %v4216_v34  ;;  %3671 = vpow2.f32 %v881_v24  ;;  %v879_v30 = vmul.f32 1.442695, %v870_v33  ;;  %v4231_v38 = vpop.f32.mrf.mxu0  ;;  %v4233_v48 = vpop.eup %3663 }
 0x10d   :  { %3673 = vpow2.f32 %v885_v32  ;;  %v883_v50 = vmul.f32 1.442695, %v872_v35  ;;  %v887_v53 = vmul.f32 1.442695, %v874_v40  ;;  %v944_v59 = vrot.slane %v943_v44, 2  ;;  %v4238_v62 = vpop.eup %3665 }
 0x10e   :  { %v808_v45 = vrot.slane %v807_v46, 4  ;;  %v815_v56 = vadd.f32 %v4233_v48, %v814_v47  ;;  %3675 = vpow2.f32 %v889_v49  ;;  %v4236_v61 = vpop.f32.mrf.mxu0  ;;  %v891_v2 = vmul.f32 1.442695, %v876_v42 }
 0x10f   :  { %3677 = vpow2.f32 %v879_v30  ;;  %v951_v5 = vrot.slane %v950_v25, 4  ;;  %1035 = vmax.xlane.f32.xlu1 %v4200_v8  ;;  %v733_v6 = vrot.slane %v732_v13, 1  ;;  %v945_v63 = vmax.f32 %v943_v44, %v944_v59 }
 0x110   :  { %v809_v7 = vadd.f32 %v808_v45, %v807_v46  ;;  %v816_v57 = vadd.f32 %v4238_v62, %v815_v56  ;;  %3679 = vpow2.f32 %v883_v50  ;;  %v4242_v12 = vpop.f32.mrf.mxu0 }
 0x111   :  { %v952_v3 = vmax.f32 %v950_v25, %v951_v5  ;;  %v734_v16 = vadd.f32 %v733_v6, %v732_v13  ;;  %3681 = vpow2.f32 %v887_v53  ;;  %v946_v18 = vrot.slane %v945_v63, 1 }
 0x112   :  { %v817_v17 = vrot.slane %v816_v57, 4  ;;  %v4244_v21 = vpop.f32.mrf.mxu0  ;;  %v810_v22 = vrot.slane %v809_v7, 2 }
 0x113   :  { %v953_v23 = vrot.slane %v952_v3, 2  ;;  %1041 = vmax.xlane.f32.xlu0 %v4244_v21  ;;  %3683 = vrcp.f32 %v734_v16  ;;  %v947_v24 = vmax.f32 %v945_v63, %v946_v18 }
 0x114   :  { %v818_v31 = vadd.f32 %v817_v17, %v816_v57  ;;  %3685 = vpow2.f32 %v891_v2  ;;  %v811_v32 = vadd.f32 %v810_v22, %v809_v7  ;;  %v59_v22 = vld [vmem:[%s4944_s1 + $0x110] sm:$0xff] }
 0x115   :  { %v954_v41 = vmax.f32 %v952_v3, %v953_v23  ;;  %v957_v33 = vsub.f32 %v4155_v9, %v947_v24  ;;  %v959_v13 = vsub.f32 %v4172_v19, %v947_v24  ;;  %v961_v25 = vsub.f32 %v4182_v36, %v947_v24  ;;  %v58_v19 = vld [vmem:[%s4944_s1 + $0x108] sm:$0xff] }
 0x116   :  { %v3668_v49 = vpop.eup %3667  ;;  %v963_v35 = vsub.f32 %v4190_v52, %v947_v24  ;;  %v812_v44 = vrot.slane %v811_v32, 1  ;;  %v819_v46 = vrot.slane %v818_v31, 2  ;;  %3229 = vmatmul.mubr.msk.f32.gmra.mxu0 %vm73_vm0, %v58_v19 }
 0x117   :  { %v955_v40 = vrot.slane %v954_v41, 1  ;;  %1039 = vmax.xlane.f32.xlu0 %v4236_v61  ;;  %v736_v42 = vmul.f32 0.17677669, %v3668_v49  ;;  %v965_v30 = vmul.f32 1.442695, %v957_v33  ;;  %486 = vmatprep.mubr.f32.mxu0 %v4949_v4 }
 0x118   :  { %v4252_v47 = vpop.eup %3669  ;;  %v969_v50 = vmul.f32 1.442695, %v959_v13  ;;  %v973_v53 = vmul.f32 1.442695, %v961_v25  ;;  %v977_v9 = vmul.f32 1.442695, %v963_v35 }
 0x119   :  { %v4254_v45 = vpop.eup %3671  ;;  %v956_v56 = vmax.f32 %v954_v41, %v955_v40  ;;  %v4260_v36 = vmul.f32 %v4157_v51, %v736_v42  ;;  %v4263_v52 = vmul.f32 %v4148_v1, %v736_v42  ;;  %3687 = vpow2.f32 %v965_v30  ;;  %v60_v13 = vld [vmem:[%s4944_s1 + $0x118] sm:$0xff] }
 0x11a   :  { %v4265_v59 = vpop.eup %3673  ;;  %v893_v2 = vadd.f32 %v4254_v45, %v4252_v47  ;;  %v4271_v5 = vmul.f32 %v4142_v58, %v736_v42  ;;  %v4274_v6 = vmul.f32 %v4138_v55, %v736_v42  ;;  %3689 = vpow2.f32 %v969_v50  ;;  %3230 = vmatmul.mubr.msk.f32.gmra.mxu0 %vm73_vm0, %v59_v22 }
 0x11b   :  { %v4276_v7 = vpop.eup %3675  ;;  %v958_v1 = vsub.f32 %v4163_v14, %v956_v56  ;;  %v960_v51 = vsub.f32 %v4177_v27, %v956_v56  ;;  %v962_v57 = vsub.f32 %v4186_v43, %v956_v56  ;;  %3691 = vpow2.f32 %v973_v53  ;;  %492 = vmatprep.mubr.f32.mxu0 %v4949_v4 }
 0x11c   :  { %v4282_v63 = vpop.eup %3677  ;;  %v894_v3 = vadd.f32 %v4265_v59, %v893_v2  ;;  %v964_v58 = vsub.f32 %v4194_v0, %v956_v56  ;;  %v813_v55 = vadd.f32 %v812_v44, %v811_v32  ;;  %3693 = vpow2.f32 %v977_v9 }
 0x11d   :  { %v4286_v16 = vpop.eup %3679  ;;  %v967_v17 = vmul.f32 1.442695, %v958_v1  ;;  %v971_v18 = vmul.f32 1.442695, %v960_v51  ;;  %v975_v43 = vmul.f32 1.442695, %v962_v57  ;;  %v820_v0 = vadd.f32 %v819_v46, %v818_v31 }
 0x11e   :  { %v895_v14 = vadd.f32 %v4276_v7, %v894_v3  ;;  %v902_v27 = vadd.f32 %v4286_v16, %v4282_v63  ;;  %3695 = vrcp.f32 %v813_v55  ;;  %v4294_v23 = vpop.eup %3681  ;;  %v979_v49 = vmul.f32 1.442695, %v964_v58  ;;  %3231 = vmatmul.mubr.msk.f32.gmra.mxu0 %vm73_vm0, %v60_v13 }
 0x11f   :  { %3697 = vpow2.f32 %v967_v17  ;;  %v821_v35 = vrot.slane %v820_v0, 1  ;;  %498 = vmatprep.mubr.f32.mxu0 %v4949_v4 }
 0x120   :  { %v3684_v24 = vpop.eup %3683  ;;  %v896_v32 = vrot.slane %v895_v14, 4  ;;  %v903_v41 = vadd.f32 %v4294_v23, %v902_v27  ;;  %3699 = vpow2.f32 %v971_v18 }
 0x121   :  { %v4299_v33 = vpop.eup %3685  ;;  %v738_v25 = vmul.f32 0.17677669, %v3684_v24  ;;  %3701 = vpow2.f32 %v975_v43  ;;  %v822_v9 = vadd.f32 %v821_v35, %v820_v0 }
 0x122   :  { %v897_v40 = vadd.f32 %v896_v32, %v895_v14  ;;  %v904_v42 = vadd.f32 %v4299_v33, %v903_v41  ;;  %3703 = vpow2.f32 %v979_v49 }
 0x123   :  { %v4307_v31 = vmul.f32 %v4179_v28, %v738_v25  ;;  %v4310_v44 = vmul.f32 %v4174_v20, %v738_v25  ;;  %v4313_v46 = vmul.f32 %v4165_v54, %v738_v25  ;;  %v4316_v30 = vmul.f32 %v4160_v11, %v738_v25 }
 0x124   :  { %v905_v50 = vrot.slane %v904_v42, 4  ;;  %v898_v53 = vrot.slane %v897_v40, 2  ;;  %3705 = vrcp.f32 %v822_v9 }
 0x125   :  { %4967 = vst [vmem:[#allocation7_spill] sm:$0xff] %v4307_v31  ;;  %4968 = vst [vmem:[#allocation8_spill] sm:$0xff] %v4310_v44 }
 0x126   :  { %4969 = vst [vmem:[#allocation9_spill] sm:$0xff] %v4313_v46  ;;  %4970 = vst [vmem:[#allocation10_spill] sm:$0xff] %v4316_v30  ;;  %v906_v56 = vadd.f32 %v905_v50, %v904_v42  ;;  %v899_v19 = vadd.f32 %v898_v53, %v897_v40  ;;  %v4319_v28 = vpop.eup %3687 }
 0x127   :  { %v4321_v2 = vpop.eup %3689 }
 0x128   :  { %v900_v20 = vrot.slane %v899_v19, 1  ;;  %v907_v1 = vrot.slane %v906_v56, 2  ;;  %v3692_v54 = vpop.eup %3691  ;;  %v981_v11 = vadd.f32 %v4321_v2, %v4319_v28 }
 0x129   :  { %v3694_v51 = vpop.eup %3693 }
 0x12a   :  { %v901_v57 = vadd.f32 %v900_v20, %v899_v19  ;;  %v908_v3 = vadd.f32 %v907_v1, %v906_v56  ;;  %v982_v55 = vadd.f32 %v3692_v54, %v981_v11 }
 0x12b   :  { %v3696_v58 = vpop.eup %3695 }
 0x12c   :  { %v3698_v17 = vpop.eup %3697  ;;  %v824_v18 = vmul.f32 0.17677669, %v3696_v58  ;;  %3707 = vrcp.f32 %v901_v57  ;;  %v909_v14 = vrot.slane %v908_v3, 1  ;;  %v983_v43 = vadd.f32 %v3694_v51, %v982_v55 }
 0x12d   :  { %v3700_v27 = vpop.eup %3699 }
 0x12e   :  { %v990_v22 = vadd.f32 %v3700_v27, %v3698_v17  ;;  %v4326_v0 = vmul.f32 %v4214_v29, %v824_v18  ;;  %v4329_v24 = vmul.f32 %v4208_v15, %v824_v18  ;;  %v4332_v32 = vmul.f32 %v4202_v60, %v824_v18  ;;  %v3702_v41 = vpop.eup %3701 }
 0x12f   :  { %v984_v49 = vrot.slane %v983_v43, 4  ;;  %v4335_v13 = vmul.f32 %v4198_v10, %v824_v18  ;;  %v910_v25 = vadd.f32 %v909_v14, %v908_v3  ;;  %v3704_v40 = vpop.eup %3703 }
 0x130   :  { %v991_v35 = vadd.f32 %v3702_v41, %v990_v22 }
 0x131   :  { %v985_v42 = vadd.f32 %v984_v49, %v983_v43  ;;  %3709 = vrcp.f32 %v910_v25  ;;  %v3706_v53 = vpop.eup %3705 }
 0x132   :  { %v992_v50 = vadd.f32 %v3704_v40, %v991_v35  ;;  %v826_v56 = vmul.f32 0.17677669, %v3706_v53 }
 0x133   :  { %v986_v29 = vrot.slane %v985_v42, 2 }
 0x134   :  { %v993_v9 = vrot.slane %v992_v50, 4  ;;  %v4338_v60 = vmul.f32 %v4238_v62, %v826_v56  ;;  %v4341_v20 = vmul.f32 %v4233_v48, %v826_v56  ;;  %v4344_v10 = vmul.f32 %v4223_v39, %v826_v56 }
 0x135   :  { %v987_v15 = vadd.f32 %v986_v29, %v985_v42  ;;  %v4347_v11 = vmul.f32 %v4216_v34, %v826_v56 }
 0x136   :  { %v994_v19 = vadd.f32 %v993_v9, %v992_v50  ;;  %4971 = vst [vmem:[#allocation11_spill] sm:$0xff] %v4338_v60  ;;  %4972 = vst [vmem:[#allocation12_spill] sm:$0xff] %v4341_v20 }
 0x137   :  { %4973 = vst [vmem:[#allocation13_spill] sm:$0xff] %v4344_v10  ;;  %v988_v1 = vrot.slane %v987_v15, 1  ;;  %4974 = vst [vmem:[#allocation14_spill] sm:$0xff] %v4347_v11 }
 0x138   :  { %v995_v57 = vrot.slane %v994_v19, 2 }
 0x139   :  { %v3708_v3 = vpop.eup %3707  ;;  %v989_v58 = vadd.f32 %v988_v1, %v987_v15 }
 0x13a   :  { %v912_v55 = vmul.f32 0.17677669, %v3708_v3  ;;  %v996_v18 = vadd.f32 %v995_v57, %v994_v19 }
 0x13b   :  { %3711 = vrcp.f32 %v989_v58 }
 0x13c   :  { %v4350_v14 = vmul.f32 %v4276_v7, %v912_v55  ;;  %v4353_v62 = vmul.f32 %v4265_v59, %v912_v55  ;;  %v4356_v48 = vmul.f32 %v4254_v45, %v912_v55  ;;  %v4359_v39 = vmul.f32 %v4252_v47, %v912_v55 }
 0x13d   :  { %v997_v34 = vrot.slane %v996_v18, 1 }
 0x13e   :  { %v3710_v43 = vpop.eup %3709 }
 0x13f   :  { %v914_v22 = vmul.f32 0.17677669, %v3710_v43  ;;  %v998_v49 = vadd.f32 %v997_v34, %v996_v18 }
 0x141   :  { %v4362_v25 = vmul.f32 %v4299_v33, %v914_v22  ;;  %v4365_v35 = vmul.f32 %v4294_v23, %v914_v22  ;;  %v4368_v7 = vmul.f32 %v4286_v16, %v914_v22  ;;  %v4371_v59 = vmul.f32 %v4282_v63, %v914_v22 }
 0x142   :  { %3713 = vrcp.f32 %v998_v49 }
 0x143   :  { %4975 = vst [vmem:[#allocation15_spill] sm:$0xff] %v4362_v25  ;;  %4976 = vst [vmem:[#allocation16_spill] sm:$0xff] %v4365_v35 }
 0x144   :  { %4977 = vst [vmem:[#allocation17_spill] sm:$0xff] %v4368_v7  ;;  %4978 = vst [vmem:[#allocation18_spill] sm:$0xff] %v4371_v59 }
 0x148   :  { %v3712_v45 = vpop.eup %3711 }
 0x149   :  { %v1000_v47 = vmul.f32 0.17677669, %v3712_v45 }
 0x14b   :  { %v4373_v42 = vmul.f32 %v3694_v51, %v1000_v47  ;;  %v4375_v50 = vmul.f32 %v3692_v54, %v1000_v47  ;;  %v4378_v53 = vmul.f32 %v4321_v2, %v1000_v47  ;;  %v4381_v33 = vmul.f32 %v4319_v28, %v1000_v47  ;;  %v4391_v51 = vpop.f32.mrf.mxu0 }
 0x14d   :  { %v4393_v54 = vpop.f32.mrf.mxu0 }
 0x14f   :  { %v3714_v23 = vpop.eup %3713  ;;  %v4395_v15 = vpop.f32.mrf.mxu0 }
 0x150   :  { %v1002_v29 = vmul.f32 0.17677669, %v3714_v23 }
 0x151   :  { %v4397_v19 = vpop.f32.mrf.mxu0 }
 0x152   :  { %v4383_v16 = vmul.f32 %v3704_v40, %v1002_v29  ;;  %v4385_v9 = vmul.f32 %v3702_v41, %v1002_v29  ;;  %v4387_v63 = vmul.f32 %v3700_v27, %v1002_v29  ;;  %v4389_v56 = vmul.f32 %v3698_v17, %v1002_v29 }
 0x153   :  { %v4401_v41 = vpop.f32.mrf.mxu0 }
 0x154   :  { %4979 = vst [vmem:[#allocation19_spill] sm:$0xff] %v4383_v16  ;;  %4980 = vst [vmem:[#allocation20_spill] sm:$0xff] %v4385_v9  ;;  %v4983_v9 = vmov 0.0   ;;  %v62_v16 = vld [vmem:[%s4944_s1 + $0x128] sm:$0xff] }
 0x155   :  { %4981 = vst [vmem:[#allocation21_spill] sm:$0xff] %v4387_v63  ;;  %4982 = vst [vmem:[#allocation22_spill] sm:$0xff] %v4389_v56  ;;  %v4405_v18 = vpop.f32.mrf.mxu0  ;;  %v61_v63 = vld [vmem:[%s4944_s1 + $0x120] sm:$0xff] }
 0x156   :  { %3232 = vmatmul.mubr.msk.f32.gmra.mxu0 %vm73_vm0, %v61_v63  ;;  %v64_v63 = vld [vmem:[%s4944_s1 + $0x138] sm:$0xff] }
 0x157   :  { %504 = vmatprep.mubr.f32.mxu0 %v4983_v9 }
 0x15a   :  { %3233 = vmatmul.mubr.msk.f32.gmra.mxu0 %vm73_vm0, %v62_v16 }
 0x15b   :  { %510 = vmatprep.mubr.f32.mxu0 %v4983_v9 }
 0x194   :  { %v1038_v2 = vpop.xlane.xlu1 %1037 }
 0x195   :  { %v1068_v28 = vsub.f32 %v4221_v37, %v1038_v2  ;;  %v4407_v37 = vpop.f32.mrf.mxu0 }
 0x197   :  { %v1085_v17 = vmul.f32 1.442695, %v1068_v28 }
 0x198   :  { %v1036_v27 = vpop.xlane.xlu1 %1035 }
 0x199   :  { %v1067_v58 = vsub.f32 %v4200_v8, %v1036_v27 }
 0x19b   :  { %v1083_v43 = vmul.f32 1.442695, %v1067_v58 }
 0x19c   :  { %v1042_v1 = vpop.xlane.xlu0 %1041 }
 0x19d   :  { %v1070_v40 = vsub.f32 %v4244_v21, %v1042_v1  ;;  %v422_v21 = vpop.f32.mrf.mxu0 }
 0x19f   :  { %v1089_v57 = vmul.f32 1.442695, %v1070_v40  ;;  %v4409_v22 = vpop.f32.mrf.mxu0 }
 0x1a0   :  { %v1040_v3 = vpop.xlane.xlu0 %1039 }
 0x1a1   :  { %3715 = vpow2.f32 %v1089_v57  ;;  %v1069_v55 = vsub.f32 %v4236_v61, %v1040_v3  ;;  %v4411_v49 = vpop.f32.mrf.mxu0 }
 0x1a2   :  { %3717 = vpow2.f32 %v1085_v17 }
 0x1a3   :  { %v1087_v34 = vmul.f32 1.442695, %v1069_v55  ;;  %v4415_v47 = vpop.f32.mrf.mxu0 }
 0x1a5   :  { %3719 = vpow2.f32 %v1087_v34  ;;  %v4421_v23 = vpop.f32.mrf.mxu0 }
 0x1a6   :  { %3721 = vpow2.f32 %v1083_v43 }
 0x1a7   :  { %v4426_v2 = vpop.f32.mrf.mxu0 }
 0x1a9   :  { %v4430_v28 = vpop.f32.mrf.mxu0 }
 0x1ab   :  { %v4432_v1 = vpop.f32.mrf.mxu0 }
 0x1ad   :  { %v4435_v40 = vpop.f32.mrf.mxu0 }
 0x1ae   :  { %v3716_v45 = vpop.eup %3715 }
 0x1af   :  { %1121 = vadd.xlane.f32.xlu0 %v3716_v45  ;;  %v4413_v8 = vpop.eup %3717  ;;  %v4437_v27 = vpop.f32.mrf.mxu0 }
 0x1b1   :  { %v4439_v57 = vpop.f32.mrf.mxu0 }
 0x1b2   :  { %v4417_v61 = vpop.eup %3719 }
 0x1b3   :  { %1117 = vadd.xlane.f32.xlu0 %v4413_v8  ;;  %1119 = vadd.xlane.f32.xlu1 %v4417_v61  ;;  %v4423_v29 = vpop.eup %3721  ;;  %v4441_v17 = vpop.f32.mrf.mxu0 }
 0x1b5   :  { %v4443_v3 = vpop.f32.mrf.mxu0 }
 0x1b7   :  { %1115 = vadd.xlane.f32.xlu1 %v4423_v29  ;;  %1049 = vmax.xlane.f32.xlu0 %v422_v21  ;;  %v4445_v58 = vpop.f32.mrf.mxu0 }
 0x1b9   :  { %v4447_v55 = vpop.f32.mrf.mxu0 }
 0x1bb   :  { %1047 = vmax.xlane.f32.xlu1 %v4405_v18  ;;  %1045 = vmax.xlane.f32.xlu0 %v4397_v19  ;;  %v4449_v34 = vpop.f32.mrf.mxu0 }
 0x1bd   :  { %v4451_v43 = vpop.f32.mrf.mxu0 }
 0x1bf   :  { %1043 = vmax.xlane.f32.xlu1 %v4393_v54  ;;  %v4453_v4 = vpop.f32.mrf.mxu0 }
 0x1c1   :  { %v476_v56 = vpop.f32.mrf.mxu0 }
 0x1c2   :  { %3412 = vmatprep.mubr.f32.mxu1 %v476_v56  ;;  %v63_v56 = vld [vmem:[%s4944_s1 + $0x130] sm:$0xff] }
 0x1c3   :  { %3234 = vmatmul.mubr.msk.f32.gmra.mxu0 %vm73_vm0, %v63_v56  ;;  %v4477_v46 = vpop.f32.mrf.mxu0 }
 0x1c4   :  { %516 = vmatprep.mubr.f32.mxu0 %v4983_v9 }
 0x1c7   :  { %3235 = vmatmul.mubr.msk.f32.gmra.mxu0 %vm73_vm0, %v64_v63 }
 0x1c8   :  { %522 = vmatprep.mubr.f32.mxu0 %v4983_v9 }
 0x238   :  { %v1122_v59 = vpop.xlane.xlu0 %1121 }
 0x239   :  { %3723 = vrcp.f32 %v1122_v59 }
 0x23c   :  { %v1120_v16 = vpop.xlane.xlu1 %1119  ;;  %v1118_v7 = vpop.xlane.xlu0 %1117 }
 0x23d   :  { %3725 = vrcp.f32 %v1120_v16 }
 0x23e   :  { %3727 = vrcp.f32 %v1118_v7 }
 0x240   :  { %v1116_v35 = vpop.xlane.xlu1 %1115  ;;  %v1050_v25 = vpop.xlane.xlu0 %1049 }
 0x241   :  { %3729 = vrcp.f32 %v1116_v35  ;;  %v1074_v56 = vsub.f32 %v422_v21, %v1050_v25  ;;  %v482_v35 = vpop.f32.mrf.mxu0 }
 0x243   :  { %v1097_v11 = vmul.f32 1.442695, %v1074_v56 }
 0x244   :  { %v1048_v10 = vpop.xlane.xlu1 %1047  ;;  %v1046_v20 = vpop.xlane.xlu0 %1045 }
 0x245   :  { %3731 = vpow2.f32 %v1097_v11  ;;  %v1073_v60 = vsub.f32 %v4405_v18, %v1048_v10  ;;  %v1072_v63 = vsub.f32 %v4397_v19, %v1046_v20 }
 0x246   :  { %v3724_v30 = vpop.eup %3723 }
 0x247   :  { %v1095_v59 = vmul.f32 1.442695, %v1073_v60  ;;  %v1093_v44 = vmul.f32 1.442695, %v1072_v63  ;;  %v1182_v31 = vmul.f32 %v3724_v30, %v3716_v45  ;;  %v4482_v30 = vpop.f32.mrf.mxu0 }
 0x248   :  { %v1044_v16 = vpop.xlane.xlu1 %1043 }
 0x249   :  { %3733 = vpow2.f32 %v1095_v59  ;;  %v1071_v7 = vsub.f32 %v4393_v54, %v1044_v16  ;;  %3404 = vmatprep.subr.mxu1 %v1182_v31 }
 0x24a   :  { %v3726_v25 = vpop.eup %3725  ;;  %3735 = vpow2.f32 %v1093_v44  ;;  %3405 = vmatpush3.xpose.msra.mxu1 %v1182_v31  ;;  %v488_v44 = vpop.f32.mrf.mxu0 }
 0x24b   :  { %v3728_v11 = vpop.eup %3727  ;;  %v1091_v21 = vmul.f32 1.442695, %v1071_v7  ;;  %v1181_v10 = vmul.f32 %v3726_v25, %v4417_v61 }
 0x24c   :  { %v1180_v20 = vmul.f32 %v3728_v11, %v4413_v8  ;;  %v4487_v18 = vpop.f32.mrf.mxu0 }
 0x24d   :  { %3737 = vpow2.f32 %v1091_v21  ;;  %3406 = vmatprep.subr.mxu1 %v1181_v10 }
 0x24e   :  { %v3730_v60 = vpop.eup %3729  ;;  %3407 = vmatpush3.xpose.msra.mxu1 %v1181_v10  ;;  %v494_v61 = vpop.f32.mrf.mxu0 }
 0x24f   :  { %3408 = vmatprep.subr.mxu1 %v1180_v20  ;;  %v1179_v54 = vmul.f32 %v3730_v60, %v4423_v29 }
 0x252   :  { %v3732_v19 = vpop.eup %3731  ;;  %3409 = vmatpush3.xpose.msra.mxu1 %v1180_v20 }
 0x253   :  { %3410 = vmatprep.subr.mxu1 %v1179_v54  ;;  %1129 = vadd.xlane.f32.xlu0 %v3732_v19 }
 0x256   :  { %v4485_v31 = vpop.eup %3733  ;;  %3411 = vmatpush3.xpose.msra.mxu1 %v1179_v54 }
 0x257   :  { %v4489_v45 = vpop.eup %3735  ;;  %3418 = vmatprep.subr.mxu1 %v4260_v36  ;;  %1127 = vadd.xlane.f32.xlu1 %v4485_v31 }
 0x258   :  { %1125 = vadd.xlane.f32.xlu0 %v4489_v45 }
 0x259   :  { %3413 = vmatmul.mubr.f32.vlgmr.msra.gmra.mxu1 %v482_v35 }
 0x25a   :  { %v4494_v8 = vpop.eup %3737  ;;  %3419 = vmatpush3.msra.mxu1 %v4260_v36  ;;  %3415 = vmatprep.mubr.f32.mxu1 %v488_v44  ;;  %v65_v36 = vld [vmem:[%s4944_s1 + $0x140] sm:$0xff] }
 0x25b   :  { %1123 = vadd.xlane.f32.xlu1 %v4494_v8  ;;  %3420 = vmatprep.subr.mxu1 %v4263_v52 }
 0x25c   :  { %1057 = vmax.xlane.f32.xlu0 %v4435_v40  ;;  %3421 = vmatpush3.msra.mxu1 %v4263_v52  ;;  %v66_v52 = vld [vmem:[%s4944_s1 + $0x148] sm:$0xff] }
 0x25d   :  { %3422 = vmatprep.subr.mxu1 %v4271_v5  ;;  %3416 = vmatmul.mubr.f32.gmra.mxu1 %v494_v61 }
 0x25e   :  { %3423 = vmatpush3.msra.mxu1 %v4271_v5  ;;  %3236 = vmatmul.mubr.msk.f32.gmra.mxu0 %vm73_vm0, %v65_v36  ;;  %v67_v5 = vld [vmem:[%s4944_s1 + $0x150] sm:$0xff] }
 0x25f   :  { %1055 = vmax.xlane.f32.xlu1 %v4430_v28  ;;  %3424 = vmatprep.subr.mxu1 %v4274_v6 }
 0x260   :  { %1053 = vmax.xlane.f32.xlu0 %v4421_v23  ;;  %3425 = vmatpush3.msra.mxu1 %v4274_v6  ;;  %v68_v6 = vld [vmem:[%s4944_s1 + $0x158] sm:$0xff] }
 0x261   :  { %528 = vmatprep.mubr.f32.mxu0 %v4983_v9 }
 0x262   :  { %3237 = vmatmul.mubr.msk.f32.gmra.mxu0 %vm73_vm0, %v66_v52 }
 0x263   :  { %1051 = vmax.xlane.f32.xlu1 %v4411_v49  ;;  %534 = vmatprep.mubr.f32.mxu0 %v4983_v9 }
 0x266   :  { %3238 = vmatmul.mubr.msk.f32.gmra.mxu0 %vm73_vm0, %v67_v5 }
 0x267   :  { %540 = vmatprep.mubr.f32.mxu0 %v4983_v9 }
 0x26a   :  { %3239 = vmatmul.mubr.msk.f32.gmra.mxu0 %vm73_vm0, %v68_v6 }
 0x26b   :  { %546 = vmatprep.mubr.f32.mxu0 %v4983_v9 }
 0x2dc   :  { %v1130_v29 = vpop.xlane.xlu0 %1129 }
 0x2dd   :  { %3739 = vrcp.f32 %v1130_v29 }
 0x2e0   :  { %v1128_v56 = vpop.xlane.xlu1 %1127 }
 0x2e1   :  { %v1126_v63 = vpop.xlane.xlu0 %1125 }
 0x2e4   :  { %v1124_v59 = vpop.xlane.xlu1 %1123 }
 0x2e5   :  { %v1058_v16 = vpop.xlane.xlu0 %1057 }
 0x2e6   :  { %v1078_v7 = vsub.f32 %v4435_v40, %v1058_v16 }
 0x2e8   :  { %v1105_v25 = vmul.f32 1.442695, %v1078_v7  ;;  %v1056_v35 = vpop.xlane.xlu1 %1055 }
 0x2e9   :  { %v1077_v11 = vsub.f32 %v4430_v28, %v1056_v35  ;;  %v1054_v21 = vpop.xlane.xlu0 %1053 }
 0x2ea   :  { %v3740_v10 = vpop.eup %3739  ;;  %3741 = vpow2.f32 %v1105_v25  ;;  %v1076_v20 = vsub.f32 %v4421_v23, %v1054_v21 }
 0x2eb   :  { %v1103_v60 = vmul.f32 1.442695, %v1077_v11  ;;  %v1186_v54 = vmul.f32 %v3740_v10, %v3732_v19 }
 0x2ec   :  { %v1101_v44 = vmul.f32 1.442695, %v1076_v20  ;;  %v1052_v61 = vpop.xlane.xlu1 %1051 }
 0x2ed   :  { %3743 = vpow2.f32 %v1103_v60  ;;  %v1075_v36 = vsub.f32 %v4411_v49, %v1052_v61  ;;  %3432 = vmatprep.subr.mxu1 %v1186_v54  ;;  %v4548_v49 = vpop.f32.mrf.mxu0  ;;  %v69_v61 = vld [vmem:[%s4944_s1 + $0x160] sm:$0xff] }
 0x2ee   :  { %3745 = vpow2.f32 %v1101_v44  ;;  %3240 = vmatmul.mubr.msk.f32.gmra.mxu0 %vm73_vm0, %v69_v61 }
 0x2ef   :  { %v1099_v52 = vmul.f32 1.442695, %v1075_v36  ;;  %v500_v19 = vpop.f32.mrf.mxu0  ;;  %552 = vmatprep.mubr.f32.mxu0 %v4983_v9 }
 0x2f1   :  { %3747 = vpow2.f32 %v1099_v52  ;;  %v4550_v16 = vpop.f32.mrf.mxu0 }
 0x2f2   :  { %3749 = vrcp.f32 %v1128_v56 }
 0x2f3   :  { %3751 = vrcp.f32 %v1126_v63  ;;  %v506_v56 = vpop.f32.mrf.mxu0 }
 0x2f4   :  { %3753 = vrcp.f32 %v1124_v59 }
 0x2f5   :  { %v4558_v10 = vpop.f32.mrf.mxu0 }
 0x2f7   :  { %v4532_v40 = vpop.eup %3741  ;;  %v512_v20 = vpop.f32.mrf.mxu0 }
 0x2f8   :  { %1137 = vadd.xlane.f32.xlu0 %v4532_v40 }
 0x2f9   :  { %v4561_v60 = vpop.f32.mrf.mxu0 }
 0x2fa   :  { %v4535_v28 = vpop.eup %3743 }
 0x2fb   :  { %v4537_v5 = vpop.eup %3745  ;;  %1135 = vadd.xlane.f32.xlu1 %v4535_v28 }
 0x2fc   :  { %1133 = vadd.xlane.f32.xlu0 %v4537_v5 }
 0x2fe   :  { %v4541_v23 = vpop.eup %3747 }
 0x2ff   :  { %1131 = vadd.xlane.f32.xlu1 %v4541_v23  ;;  %v3750_v29 = vpop.eup %3749 }
 0x300   :  { %1065 = vmax.xlane.f32.xlu0 %v4451_v43  ;;  %v1185_v25 = vmul.f32 %v3750_v29, %v4485_v31  ;;  %v3752_v11 = vpop.eup %3751 }
 0x301   :  { %v1184_v59 = vmul.f32 %v3752_v11, %v4489_v45  ;;  %v3754_v21 = vpop.eup %3753  ;;  %v518_v45 = vpop.f32.mrf.mxu0 }
 0x302   :  { %v1183_v31 = vmul.f32 %v3754_v21, %v4494_v8 }
 0x303   :  { %1063 = vmax.xlane.f32.xlu1 %v4447_v55 }
 0x304   :  { %1061 = vmax.xlane.f32.xlu0 %v4443_v3 }
 0x307   :  { %1059 = vmax.xlane.f32.xlu1 %v4439_v57 }
 0x319   :  { %v3414_v6 = vpop.f32.mrf.mxu1 }
 0x31b   :  { %v1481_v7 = vpop.f32.mrf.mxu1 }
 0x31c   :  { %3426 = vmatprep.mubr.msk.f32.mxu1 %vm1500_vm1, %v1481_v7 }
 0x31d   :  { %3427 = vmatmul.mubr.msk.f32.vlgmr.msra.gmra.mxu1 %vm1500_vm1, %v3414_v6  ;;  %v3417_v35 = vpop.f32.mrf.mxu1 }
 0x31e   :  { %3433 = vmatpush3.xpose.msra.mxu1 %v1186_v54 }
 0x31f   :  { %3434 = vmatprep.subr.mxu1 %v1185_v25  ;;  %v1491_v63 = vpop.f32.mrf.mxu1 }
 0x320   :  { %3429 = vmatprep.mubr.msk.f32.mxu1 %vm1500_vm1, %v1491_v63 }
 0x321   :  { %3430 = vmatmul.mubr.msk.f32.gmra.mxu1 %vm1500_vm1, %v3417_v35 }
 0x322   :  { %3435 = vmatpush3.xpose.msra.mxu1 %v1185_v25  ;;  %3440 = vmatprep.mubr.f32.mxu1 %v500_v19 }
 0x323   :  { %3436 = vmatprep.subr.mxu1 %v1184_v59 }
 0x326   :  { %3437 = vmatpush3.xpose.msra.mxu1 %v1184_v59 }
 0x327   :  { %3438 = vmatprep.subr.mxu1 %v1183_v31 }
 0x32a   :  { %3439 = vmatpush3.xpose.msra.mxu1 %v1183_v31 }
 0x32b   :  { %3446 = vmatprep.subr.mxu1 %v4326_v0 }
 0x32d   :  { %3441 = vmatmul.mubr.f32.vlgmr.msra.gmra.mxu1 %v506_v56 }
 0x32e   :  { %3447 = vmatpush3.msra.mxu1 %v4326_v0  ;;  %3443 = vmatprep.mubr.f32.mxu1 %v512_v20 }
 0x32f   :  { %3448 = vmatprep.subr.mxu1 %v4329_v24 }
 0x330   :  { %3449 = vmatpush3.msra.mxu1 %v4329_v24 }
 0x331   :  { %3450 = vmatprep.subr.mxu1 %v4332_v32  ;;  %3444 = vmatmul.mubr.f32.gmra.mxu1 %v518_v45 }
 0x332   :  { %3451 = vmatpush3.msra.mxu1 %v4332_v32  ;;  %v70_v32 = vld [vmem:[%s4944_s1 + $0x168] sm:$0xff] }
 0x333   :  { %3452 = vmatprep.subr.mxu1 %v4335_v13  ;;  %3241 = vmatmul.mubr.msk.f32.gmra.mxu0 %vm73_vm0, %v70_v32 }
 0x334   :  { %3453 = vmatpush3.msra.mxu1 %v4335_v13  ;;  %558 = vmatprep.mubr.f32.mxu0 %v4983_v9 }
 0x381   :  { %v1138_v8 = vpop.xlane.xlu0 %1137 }
 0x382   :  { %3755 = vrcp.f32 %v1138_v8  ;;  %v4618_v8 = vpop.f32.mrf.mxu0 }
 0x384   :  { %v1136_v54 = vpop.xlane.xlu1 %1135  ;;  %v524_v61 = vpop.f32.mrf.mxu0 }
 0x385   :  { %v1134_v44 = vpop.xlane.xlu0 %1133 }
 0x388   :  { %v1132_v0 = vpop.xlane.xlu1 %1131 }
 0x389   :  { %v1066_v36 = vpop.xlane.xlu0 %1065 }
 0x38a   :  { %v1082_v24 = vsub.f32 %v4451_v43, %v1066_v36  ;;  %v71_v43 = vld [vmem:[%s4944_s1 + $0x170] sm:$0xff] }
 0x38b   :  { %3242 = vmatmul.mubr.msk.f32.gmra.mxu0 %vm73_vm0, %v71_v43 }
 0x38c   :  { %v1113_v13 = vmul.f32 1.442695, %v1082_v24  ;;  %v1064_v52 = vpop.xlane.xlu1 %1063  ;;  %564 = vmatprep.mubr.f32.mxu0 %v4983_v9 }
 0x38d   :  { %v1081_v19 = vsub.f32 %v4447_v55, %v1064_v52  ;;  %v1062_v6 = vpop.xlane.xlu0 %1061 }
 0x38e   :  { %3757 = vpow2.f32 %v1113_v13  ;;  %v1080_v29 = vsub.f32 %v4443_v3, %v1062_v6  ;;  %v72_v3 = vld [vmem:[%s4944_s1 + $0x178] sm:$0xff]  ;;  %v4622_v13 = vpop.f32.mrf.mxu0 }
 0x38f   :  { %v3756_v7 = vpop.eup %3755  ;;  %v1111_v25 = vmul.f32 1.442695, %v1081_v19  ;;  %3243 = vmatmul.mubr.msk.f32.gmra.mxu0 %vm73_vm0, %v72_v3 }
 0x390   :  { %v1109_v35 = vmul.f32 1.442695, %v1080_v29  ;;  %v1060_v11 = vpop.xlane.xlu1 %1059  ;;  %v1190_v56 = vmul.f32 %v3756_v7, %v4532_v40  ;;  %3098 = vmatprep.mubr.f32.mxu0 %v4983_v9  ;;  %v530_v6 = vpop.f32.mrf.mxu0 }
 0x391   :  { %3759 = vpow2.f32 %v1111_v25  ;;  %v1079_v55 = vsub.f32 %v4439_v57, %v1060_v11 }
 0x392   :  { %3761 = vpow2.f32 %v1109_v35  ;;  %3460 = vmatprep.subr.mxu1 %v1190_v56  ;;  %v4630_v7 = vpop.f32.mrf.mxu0 }
 0x393   :  { %v1107_v63 = vmul.f32 1.442695, %v1079_v55 }
 0x394   :  { %v536_v25 = vpop.f32.mrf.mxu0 }
 0x395   :  { %3763 = vpow2.f32 %v1107_v63 }
 0x396   :  { %3765 = vrcp.f32 %v1136_v54  ;;  %v4633_v35 = vpop.f32.mrf.mxu0 }
 0x397   :  { %3767 = vrcp.f32 %v1134_v44 }
 0x398   :  { %3769 = vrcp.f32 %v1132_v0 }
 0x39b   :  { %v4596_v40 = vpop.eup %3757 }
 0x39c   :  { %1145 = vadd.xlane.f32.xlu0 %v4596_v40 }
 0x39e   :  { %v4599_v57 = vpop.eup %3759 }
 0x39f   :  { %v4601_v59 = vpop.eup %3761  ;;  %1143 = vadd.xlane.f32.xlu1 %v4599_v57 }
 0x3a0   :  { %1141 = vadd.xlane.f32.xlu0 %v4601_v59 }
 0x3a2   :  { %v4605_v21 = vpop.eup %3763 }
 0x3a3   :  { %1139 = vadd.xlane.f32.xlu1 %v4605_v21  ;;  %v3766_v32 = vpop.eup %3765 }
 0x3a4   :  { %1233 = vmax.xlane.f32.xlu0 %v4391_v51  ;;  %v1189_v54 = vmul.f32 %v3766_v32, %v4535_v28  ;;  %v3768_v19 = vpop.eup %3767 }
 0x3a5   :  { %v1188_v29 = vmul.f32 %v3768_v19, %v4537_v5  ;;  %v3770_v43 = vpop.eup %3769  ;;  %v542_v5 = vpop.f32.mrf.mxu0 }
 0x3a6   :  { %v1187_v28 = vmul.f32 %v3770_v43, %v4541_v23 }
 0x3a7   :  { %1231 = vmax.xlane.f32.xlu1 %v4242_v12  ;;  %v4670_v43 = vpop.f32.mrf.mxu0 }
 0x3a8   :  { %1229 = vmax.xlane.f32.xlu0 %v4231_v38 }
 0x3ab   :  { %1227 = vmax.xlane.f32.xlu1 %v4212_v26 }
 0x3dd   :  { %v4612_v31 = vpop.f32.mrf.mxu1 }
 0x3df   :  { %v4614_v20 = vpop.f32.mrf.mxu1 }
 0x3e1   :  { %v4616_v45 = vpop.f32.mrf.mxu1 }
 0x3e3   :  { %v4620_v36 = vpop.f32.mrf.mxu1 }
 0x3ed   :  { %v3442_v24 = vpop.f32.mrf.mxu1 }
 0x3ef   :  { %v1680_v52 = vpop.f32.mrf.mxu1 }
 0x3f0   :  { %3454 = vmatprep.mubr.msk.f32.mxu1 %vm1500_vm1, %v1680_v52 }
 0x3f1   :  { %3455 = vmatmul.mubr.msk.f32.vlgmr.msra.gmra.mxu1 %vm1500_vm1, %v3442_v24  ;;  %v3445_v44 = vpop.f32.mrf.mxu1 }
 0x3f2   :  { %3461 = vmatpush3.xpose.msra.mxu1 %v1190_v56 }
 0x3f3   :  { %3462 = vmatprep.subr.mxu1 %v1189_v54  ;;  %v1690_v0 = vpop.f32.mrf.mxu1 }
 0x3f4   :  { %3457 = vmatprep.mubr.msk.f32.mxu1 %vm1500_vm1, %v1690_v0 }
 0x3f5   :  { %3458 = vmatmul.mubr.msk.f32.gmra.mxu1 %vm1500_vm1, %v3445_v44 }
 0x3f6   :  { %3463 = vmatpush3.xpose.msra.mxu1 %v1189_v54  ;;  %3468 = vmatprep.mubr.f32.mxu1 %v524_v61 }
 0x3f7   :  { %3464 = vmatprep.subr.mxu1 %v1188_v29 }
 0x3fa   :  { %3465 = vmatpush3.xpose.msra.mxu1 %v1188_v29 }
 0x3fb   :  { %3466 = vmatprep.subr.mxu1 %v1187_v28 }
 0x3fe   :  { %3467 = vmatpush3.xpose.msra.mxu1 %v1187_v28  ;;  %v548_v28 = vpop.f32.mrf.mxu0 }
 0x3ff   :  { %3474 = vmatprep.subr.mxu1 %v4350_v14 }
 0x401   :  { %3469 = vmatmul.mubr.f32.vlgmr.msra.gmra.mxu1 %v530_v6 }
 0x402   :  { %3475 = vmatpush3.msra.mxu1 %v4350_v14  ;;  %3471 = vmatprep.mubr.f32.mxu1 %v536_v25 }
 0x403   :  { %3476 = vmatprep.subr.mxu1 %v4353_v62 }
 0x404   :  { %3477 = vmatpush3.msra.mxu1 %v4353_v62 }
 0x405   :  { %3478 = vmatprep.subr.mxu1 %v4356_v48  ;;  %3472 = vmatmul.mubr.f32.gmra.mxu1 %v542_v5 }
 0x406   :  { %3479 = vmatpush3.msra.mxu1 %v4356_v48 }
 0x407   :  { %3480 = vmatprep.subr.mxu1 %v4359_v39 }
 0x408   :  { %3481 = vmatpush3.msra.mxu1 %v4359_v39 }
 0x425   :  { %v1146_v23 = vpop.xlane.xlu0 %1145 }
 0x426   :  { %3771 = vrcp.f32 %v1146_v23 }
 0x428   :  { %v1144_v11 = vpop.xlane.xlu1 %1143 }
 0x429   :  { %v1142_v56 = vpop.xlane.xlu0 %1141 }
 0x42c   :  { %v1140_v14 = vpop.xlane.xlu1 %1139 }
 0x42d   :  { %v1234_v55 = vpop.xlane.xlu0 %1233 }
 0x42e   :  { %v1262_v3 = vsub.f32 %v4391_v51, %v1234_v55  ;;  %v4674_v55 = vpop.f32.mrf.mxu0 }
 0x430   :  { %v1281_v63 = vmul.f32 1.442695, %v1262_v3  ;;  %v1232_v61 = vpop.xlane.xlu1 %1231 }
 0x431   :  { %v1261_v62 = vsub.f32 %v4242_v12, %v1232_v61  ;;  %v1230_v24 = vpop.xlane.xlu0 %1229  ;;  %v554_v61 = vpop.f32.mrf.mxu0 }
 0x432   :  { %3773 = vpow2.f32 %v1281_v63  ;;  %v1260_v48 = vsub.f32 %v4231_v38, %v1230_v24 }
 0x433   :  { %v3772_v32 = vpop.eup %3771  ;;  %v1279_v52 = vmul.f32 1.442695, %v1261_v62 }
 0x434   :  { %v1277_v54 = vmul.f32 1.442695, %v1260_v48  ;;  %v1228_v39 = vpop.xlane.xlu1 %1227  ;;  %v1194_v44 = vmul.f32 %v3772_v32, %v4596_v40  ;;  %v4682_v32 = vpop.f32.mrf.mxu0 }
 0x435   :  { %3775 = vpow2.f32 %v1279_v52  ;;  %v1259_v19 = vsub.f32 %v4212_v26, %v1228_v39 }
 0x436   :  { %3777 = vpow2.f32 %v1277_v54  ;;  %3488 = vmatprep.subr.mxu1 %v1194_v44 }
 0x437   :  { %v1275_v51 = vmul.f32 1.442695, %v1259_v19 }
 0x439   :  { %3779 = vpow2.f32 %v1275_v51 }
 0x43a   :  { %3781 = vrcp.f32 %v1144_v11 }
 0x43b   :  { %3783 = vrcp.f32 %v1142_v56 }
 0x43c   :  { %3785 = vrcp.f32 %v1140_v14 }
 0x43f   :  { %v4648_v6 = vpop.eup %3773 }
 0x440   :  { %1313 = vadd.xlane.f32.xlu0 %v4648_v6 }
 0x442   :  { %v4651_v12 = vpop.eup %3775 }
 0x443   :  { %v4653_v38 = vpop.eup %3777  ;;  %1311 = vadd.xlane.f32.xlu1 %v4651_v12 }
 0x444   :  { %1309 = vadd.xlane.f32.xlu0 %v4653_v38 }
 0x446   :  { %v4657_v40 = vpop.eup %3779 }
 0x447   :  { %1307 = vadd.xlane.f32.xlu1 %v4657_v40  ;;  %v3782_v23 = vpop.eup %3781 }
 0x448   :  { %1241 = vmax.xlane.f32.xlu0 %v4409_v22  ;;  %v1193_v11 = vmul.f32 %v3782_v23, %v4599_v57  ;;  %v3784_v63 = vpop.eup %3783 }
 0x449   :  { %v1192_v24 = vmul.f32 %v3784_v63, %v4601_v59  ;;  %v3786_v48 = vpop.eup %3785 }
 0x44a   :  { %v1191_v54 = vmul.f32 %v3786_v48, %v4605_v21 }
 0x44b   :  { %1239 = vmax.xlane.f32.xlu1 %v4407_v37  ;;  %v560_v39 = vpop.f32.mrf.mxu0 }
 0x44c   :  { %1237 = vmax.xlane.f32.xlu0 %v4401_v41 }
 0x44d   :  { %v4692_v51 = vpop.f32.mrf.mxu0 }
 0x44f   :  { %1235 = vmax.xlane.f32.xlu1 %v4395_v15 }
 0x4b1   :  { %v4664_v26 = vpop.f32.mrf.mxu1 }
 0x4b3   :  { %v4666_v0 = vpop.f32.mrf.mxu1 }
 0x4b5   :  { %v4668_v29 = vpop.f32.mrf.mxu1 }
 0x4b7   :  { %v4672_v25 = vpop.f32.mrf.mxu1 }
 0x4c1   :  { %v3470_v5 = vpop.f32.mrf.mxu1 }
 0x4c3   :  { %v1878_v3 = vpop.f32.mrf.mxu1 }
 0x4c4   :  { %3482 = vmatprep.mubr.msk.f32.mxu1 %vm1500_vm1, %v1878_v3 }
 0x4c5   :  { %3483 = vmatmul.mubr.msk.f32.vlgmr.msra.gmra.mxu1 %vm1500_vm1, %v3470_v5  ;;  %v3473_v56 = vpop.f32.mrf.mxu1 }
 0x4c6   :  { %3489 = vmatpush3.xpose.msra.mxu1 %v1194_v44 }
 0x4c7   :  { %3490 = vmatprep.subr.mxu1 %v1193_v11  ;;  %v1888_v14 = vpop.f32.mrf.mxu1 }
 0x4c8   :  { %3485 = vmatprep.mubr.msk.f32.mxu1 %vm1500_vm1, %v1888_v14 }
 0x4c9   :  { %v1314_v62 = vpop.xlane.xlu0 %1313  ;;  %3486 = vmatmul.mubr.msk.f32.gmra.mxu1 %vm1500_vm1, %v3473_v56 }
 0x4ca   :  { %3491 = vmatpush3.xpose.msra.mxu1 %v1193_v11  ;;  %3787 = vrcp.f32 %v1314_v62  ;;  %3496 = vmatprep.mubr.f32.mxu1 %v548_v28  ;;  %v566_v11 = vpop.f32.mrf.mxu0 }
 0x4cb   :  { %3492 = vmatprep.subr.mxu1 %v1192_v24 }
 0x4cc   :  { %v4684_v57 = vpop.xlane.xlu1 %1311 }
 0x4cd   :  { %v4686_v52 = vpop.xlane.xlu0 %1309 }
 0x4ce   :  { %3493 = vmatpush3.xpose.msra.mxu1 %v1192_v24 }
 0x4cf   :  { %3494 = vmatprep.subr.mxu1 %v1191_v54 }
 0x4d0   :  { %v4689_v44 = vpop.xlane.xlu1 %1307 }
 0x4d1   :  { %v1242_v59 = vpop.xlane.xlu0 %1241 }
 0x4d2   :  { %3495 = vmatpush3.xpose.msra.mxu1 %v1191_v54  ;;  %v1266_v19 = vsub.f32 %v4409_v22, %v1242_v59 }
 0x4d3   :  { %3502 = vmatprep.subr.mxu1 %v4373_v42 }
 0x4d4   :  { %v1289_v28 = vmul.f32 1.442695, %v1266_v19  ;;  %v1240_v5 = vpop.xlane.xlu1 %1239 }
 0x4d5   :  { %3497 = vmatmul.mubr.f32.vlgmr.msra.gmra.mxu1 %v554_v61  ;;  %v1265_v23 = vsub.f32 %v4407_v37, %v1240_v5  ;;  %v1238_v3 = vpop.xlane.xlu0 %1237 }
 0x4d6   :  { %3789 = vpow2.f32 %v1289_v28  ;;  %3503 = vmatpush3.msra.mxu1 %v4373_v42  ;;  %v1264_v21 = vsub.f32 %v4401_v41, %v1238_v3  ;;  %3499 = vmatprep.mubr.f32.mxu1 %v560_v39 }
 0x4d7   :  { %v3788_v56 = vpop.eup %3787  ;;  %v1287_v63 = vmul.f32 1.442695, %v1265_v23  ;;  %3504 = vmatprep.subr.mxu1 %v4375_v50 }
 0x4d8   :  { %v1285_v22 = vmul.f32 1.442695, %v1264_v21  ;;  %3505 = vmatpush3.msra.mxu1 %v4375_v50  ;;  %v1236_v14 = vpop.xlane.xlu1 %1235  ;;  %v4703_v42 = vmul.f32 %v3788_v56, %v4648_v6 }
 0x4d9   :  { %3791 = vpow2.f32 %v1287_v63  ;;  %3500 = vmatmul.mubr.f32.gmra.mxu1 %v566_v11  ;;  %3506 = vmatprep.subr.mxu1 %v4378_v53  ;;  %v1263_v37 = vsub.f32 %v4395_v15, %v1236_v14 }
 0x4da   :  { %3793 = vpow2.f32 %v1285_v22  ;;  %3507 = vmatpush3.msra.mxu1 %v4378_v53 }
 0x4db   :  { %v1283_v41 = vmul.f32 1.442695, %v1263_v37  ;;  %3508 = vmatprep.subr.mxu1 %v4381_v33 }
 0x4dc   :  { %3509 = vmatpush3.msra.mxu1 %v4381_v33 }
 0x4dd   :  { %3795 = vpow2.f32 %v1283_v41  ;;  %3516 = vmatprep.subr.mxu1 %v4703_v42 }
 0x4e3   :  { %v4709_v50 = vpop.eup %3789 }
 0x4e4   :  { %1321 = vadd.xlane.f32.xlu0 %v4709_v50 }
 0x4e6   :  { %v4712_v61 = vpop.eup %3791 }
 0x4e7   :  { %v4714_v15 = vpop.eup %3793  ;;  %1319 = vadd.xlane.f32.xlu1 %v4712_v61 }
 0x4e8   :  { %1317 = vadd.xlane.f32.xlu0 %v4714_v15 }
 0x4ea   :  { %v4718_v53 = vpop.eup %3795 }
 0x4eb   :  { %1315 = vadd.xlane.f32.xlu1 %v4718_v53 }
 0x4ec   :  { %1249 = vmax.xlane.f32.xlu0 %v4437_v27 }
 0x4ef   :  { %1247 = vmax.xlane.f32.xlu1 %v4432_v1 }
 0x4f0   :  { %1245 = vmax.xlane.f32.xlu0 %v4426_v2 }
 0x4f3   :  { %1243 = vmax.xlane.f32.xlu1 %v4415_v47 }
 0x56d   :  { %v1322_v33 = vpop.xlane.xlu0 %1321 }
 0x570   :  { %v4725_v6 = vpop.xlane.xlu1 %1319 }
 0x571   :  { %v4727_v62 = vpop.xlane.xlu0 %1317 }
 0x574   :  { %v4729_v24 = vpop.xlane.xlu1 %1315 }
 0x575   :  { %v1250_v48 = vpop.xlane.xlu0 %1249 }
 0x576   :  { %v1270_v54 = vsub.f32 %v4437_v27, %v1250_v48 }
 0x578   :  { %v1297_v39 = vmul.f32 1.442695, %v1270_v54  ;;  %v1248_v59 = vpop.xlane.xlu1 %1247 }
 0x579   :  { %v1269_v19 = vsub.f32 %v4432_v1, %v1248_v59  ;;  %v1246_v28 = vpop.xlane.xlu0 %1245 }
 0x57a   :  { %3797 = vpow2.f32 %v1297_v39  ;;  %v1268_v5 = vsub.f32 %v4426_v2, %v1246_v28 }
 0x57b   :  { %v1295_v23 = vmul.f32 1.442695, %v1269_v19 }
 0x57c   :  { %v1293_v3 = vmul.f32 1.442695, %v1268_v5  ;;  %v1244_v21 = vpop.xlane.xlu1 %1243 }
 0x57d   :  { %3799 = vpow2.f32 %v1295_v23  ;;  %v1267_v11 = vsub.f32 %v4415_v47, %v1244_v21 }
 0x57e   :  { %3801 = vpow2.f32 %v1293_v3 }
 0x57f   :  { %v1291_v56 = vmul.f32 1.442695, %v1267_v11 }
 0x581   :  { %3803 = vpow2.f32 %v1291_v56 }
 0x582   :  { %3805 = vrcp.f32 %v4684_v57 }
 0x583   :  { %3807 = vrcp.f32 %v4686_v52 }
 0x584   :  { %3809 = vrcp.f32 %v4689_v44 }
 0x585   :  { %v4739_v1 = vpop.f32.mrf.mxu1  ;;  %3811 = vrcp.f32 %v1322_v33 }
 0x587   :  { %v4735_v63 = vpop.eup %3797  ;;  %v4748_v47 = vpop.f32.mrf.mxu1 }
 0x588   :  { %1329 = vadd.xlane.f32.xlu0 %v4735_v63 }
 0x589   :  { %v4752_v14 = vpop.f32.mrf.mxu1 }
 0x58a   :  { %v4741_v27 = vpop.eup %3799 }
 0x58b   :  { %v4743_v2 = vpop.eup %3801  ;;  %1327 = vadd.xlane.f32.xlu1 %v4741_v27  ;;  %v4757_v57 = vpop.f32.mrf.mxu1 }
 0x58c   :  { %1325 = vadd.xlane.f32.xlu0 %v4743_v2 }
 0x58e   :  { %v4750_v22 = vpop.eup %3803 }
 0x58f   :  { %1323 = vadd.xlane.f32.xlu1 %v4750_v22  ;;  %v3806_v52 = vpop.eup %3805 }
 0x590   :  { %1257 = vmax.xlane.f32.xlu0 %v4453_v4  ;;  %v1373_v54 = vmul.f32 %v3806_v52, %v4651_v12  ;;  %v3808_v39 = vpop.eup %3807  ;;  %v4984_v12 = vld [vmem:[#allocation7_spill] sm:$0xff] }
 0x591   :  { %v1372_v59 = vmul.f32 %v3808_v39, %v4653_v38  ;;  %v3810_v19 = vpop.eup %3809  ;;  %v4985_v38 = vld [vmem:[#allocation8_spill] sm:$0xff] }
 0x592   :  { %v1371_v28 = vmul.f32 %v3810_v19, %v4657_v40  ;;  %v4987_v40 = vld [vmem:[#allocation10_spill] sm:$0xff] }
 0x593   :  { %1255 = vmax.xlane.f32.xlu1 %v4449_v34 }
 0x594   :  { %1253 = vmax.xlane.f32.xlu0 %v4445_v58 }
 0x595   :  { %v3498_v37 = vpop.f32.mrf.mxu1 }
 0x597   :  { %v2076_v41 = vpop.f32.mrf.mxu1  ;;  %1251 = vmax.xlane.f32.xlu1 %v4441_v17 }
 0x598   :  { %3510 = vmatprep.mubr.msk.f32.mxu1 %vm1500_vm1, %v2076_v41 }
 0x599   :  { %v3501_v48 = vpop.f32.mrf.mxu1  ;;  %3511 = vmatmul.mubr.msk.f32.vlgmr.msra.gmra.mxu1 %vm1500_vm1, %v3498_v37 }
 0x59a   :  { %3517 = vmatpush3.xpose.msra.mxu1 %v4703_v42  ;;  %v3812_v42 = vpop.eup %3811 }
 0x59b   :  { %3518 = vmatprep.subr.mxu1 %v1373_v54  ;;  %v2086_v44 = vpop.f32.mrf.mxu1  ;;  %v1378_v33 = vmul.f32 %v3812_v42, %v4709_v50 }
 0x59c   :  { %3513 = vmatprep.mubr.msk.f32.mxu1 %vm1500_vm1, %v2086_v44 }
 0x59d   :  { %3514 = vmatmul.mubr.msk.f32.gmra.mxu1 %vm1500_vm1, %v3501_v48 }
 0x59e   :  { %3519 = vmatpush3.xpose.msra.mxu1 %v1373_v54  ;;  %3524 = vmatprep.mubr.f32.mxu1 %v4477_v46  ;;  %v4986_v46 = vld [vmem:[#allocation9_spill] sm:$0xff] }
 0x59f   :  { %3520 = vmatprep.subr.mxu1 %v1372_v59 }
 0x5a2   :  { %3521 = vmatpush3.xpose.msra.mxu1 %v1372_v59 }
 0x5a3   :  { %3522 = vmatprep.subr.mxu1 %v1371_v28 }
 0x5a6   :  { %3523 = vmatpush3.xpose.msra.mxu1 %v1371_v28 }
 0x5a7   :  { %3530 = vmatprep.subr.mxu1 %v4984_v12 }
 0x5a9   :  { %3525 = vmatmul.mubr.f32.vlgmr.msra.gmra.mxu1 %v4482_v30 }
 0x5aa   :  { %3527 = vmatprep.mubr.f32.mxu1 %v4487_v18  ;;  %3531 = vmatpush3.msra.mxu1 %v4984_v12 }
 0x5ab   :  { %3532 = vmatprep.subr.mxu1 %v4985_v38 }
 0x5ac   :  { %3533 = vmatpush3.msra.mxu1 %v4985_v38 }
 0x5ad   :  { %3528 = vmatmul.mubr.f32.gmra.mxu1 %v4548_v49  ;;  %3534 = vmatprep.subr.mxu1 %v4986_v46 }
 0x5ae   :  { %3535 = vmatpush3.msra.mxu1 %v4986_v46 }
 0x5af   :  { %3536 = vmatprep.subr.mxu1 %v4987_v40 }
 0x5b0   :  { %3537 = vmatpush3.msra.mxu1 %v4987_v40 }
 0x5b1   :  { %3544 = vmatprep.subr.mxu1 %v1378_v33 }
 0x611   :  { %v1330_v30 = vpop.xlane.xlu0 %1329 }
 0x614   :  { %v4783_v18 = vpop.xlane.xlu1 %1327 }
 0x615   :  { %v4785_v5 = vpop.xlane.xlu0 %1325 }
 0x618   :  { %v4787_v23 = vpop.xlane.xlu1 %1323 }
 0x619   :  { %v1258_v3 = vpop.xlane.xlu0 %1257 }
 0x61a   :  { %v1274_v49 = vsub.f32 %v4453_v4, %v1258_v3 }
 0x61c   :  { %v1305_v21 = vmul.f32 1.442695, %v1274_v49  ;;  %v1256_v11 = vpop.xlane.xlu1 %1255 }
 0x61d   :  { %v1273_v56 = vsub.f32 %v4449_v34, %v1256_v11  ;;  %v1254_v37 = vpop.xlane.xlu0 %1253 }
 0x61e   :  { %3813 = vpow2.f32 %v1305_v21  ;;  %v1272_v50 = vsub.f32 %v4445_v58, %v1254_v37 }
 0x61f   :  { %v1303_v52 = vmul.f32 1.442695, %v1273_v56 }
 0x620   :  { %v1301_v41 = vmul.f32 1.442695, %v1272_v50  ;;  %v1252_v48 = vpop.xlane.xlu1 %1251 }
 0x621   :  { %3815 = vpow2.f32 %v1303_v52  ;;  %v1271_v54 = vsub.f32 %v4441_v17, %v1252_v48 }
 0x622   :  { %3817 = vpow2.f32 %v1301_v41 }
 0x623   :  { %v1299_v39 = vmul.f32 1.442695, %v1271_v54 }
 0x625   :  { %3819 = vpow2.f32 %v1299_v39 }
 0x626   :  { %3821 = vrcp.f32 %v4725_v6 }
 0x627   :  { %3823 = vrcp.f32 %v4727_v62 }
 0x628   :  { %3825 = vrcp.f32 %v4729_v24 }
 0x629   :  { %3827 = vrcp.f32 %v1330_v30 }
 0x62a   :  { %3829 = vrcp.f32 %v4783_v18 }
 0x62b   :  { %v4793_v44 = vpop.eup %3813  ;;  %3831 = vrcp.f32 %v4785_v5 }
 0x62c   :  { %1337 = vadd.xlane.f32.xlu0 %v4793_v44  ;;  %3833 = vrcp.f32 %v4787_v23 }
 0x62e   :  { %v4796_v4 = vpop.eup %3815 }
 0x62f   :  { %v4798_v34 = vpop.eup %3817  ;;  %1335 = vadd.xlane.f32.xlu1 %v4796_v4 }
 0x630   :  { %1333 = vadd.xlane.f32.xlu0 %v4798_v34 }
 0x632   :  { %v4802_v58 = vpop.eup %3819 }
 0x633   :  { %1331 = vadd.xlane.f32.xlu1 %v4802_v58  ;;  %v3822_v38 = vpop.eup %3821 }
 0x634   :  { %v1377_v6 = vmul.f32 %v3822_v38, %v4712_v61  ;;  %v3824_v40 = vpop.eup %3823  ;;  %v4988_v61 = vld [vmem:[#allocation11_spill] sm:$0xff] }
 0x635   :  { %v1376_v24 = vmul.f32 %v3824_v40, %v4714_v15  ;;  %v3826_v3 = vpop.eup %3825  ;;  %v4989_v15 = vld [vmem:[#allocation12_spill] sm:$0xff] }
 0x636   :  { %v1375_v49 = vmul.f32 %v3826_v3, %v4718_v53  ;;  %v4991_v53 = vld [vmem:[#allocation14_spill] sm:$0xff] }
 0x659   :  { %v4806_v17 = vpop.f32.mrf.mxu1 }
 0x65b   :  { %v4809_v59 = vpop.f32.mrf.mxu1 }
 0x65d   :  { %v4811_v19 = vpop.f32.mrf.mxu1 }
 0x65f   :  { %v4814_v28 = vpop.f32.mrf.mxu1 }
 0x669   :  { %v3526_v12 = vpop.f32.mrf.mxu1 }
 0x66b   :  { %v2274_v42 = vpop.f32.mrf.mxu1 }
 0x66c   :  { %3538 = vmatprep.mubr.msk.f32.mxu1 %vm1500_vm1, %v2274_v42 }
 0x66d   :  { %v3529_v46 = vpop.f32.mrf.mxu1  ;;  %3539 = vmatmul.mubr.msk.f32.vlgmr.msra.gmra.mxu1 %vm1500_vm1, %v3526_v12 }
 0x66e   :  { %3545 = vmatpush3.xpose.msra.mxu1 %v1378_v33  ;;  %v3828_v33 = vpop.eup %3827 }
 0x66f   :  { %3546 = vmatprep.subr.mxu1 %v1377_v6  ;;  %v2284_v62 = vpop.f32.mrf.mxu1  ;;  %v1382_v30 = vmul.f32 %v3828_v33, %v4735_v63  ;;  %v3830_v56 = vpop.eup %3829 }
 0x670   :  { %3541 = vmatprep.mubr.msk.f32.mxu1 %vm1500_vm1, %v2284_v62  ;;  %v1381_v18 = vmul.f32 %v3830_v56, %v4741_v27  ;;  %v3832_v50 = vpop.eup %3831  ;;  %v4992_v27 = vld [vmem:[#allocation15_spill] sm:$0xff] }
 0x671   :  { %3542 = vmatmul.mubr.msk.f32.gmra.mxu1 %vm1500_vm1, %v3529_v46  ;;  %v1380_v23 = vmul.f32 %v3832_v50, %v4743_v2  ;;  %v3834_v41 = vpop.eup %3833  ;;  %v4993_v2 = vld [vmem:[#allocation16_spill] sm:$0xff]  ;;  %v3022_v50 = vld [vmem:[%s4946_s3] sm:$0xff] }
 0x672   :  { %3547 = vmatpush3.xpose.msra.mxu1 %v1377_v6  ;;  %3552 = vmatprep.mubr.f32.mxu1 %v4550_v16  ;;  %v4990_v16 = vld [vmem:[#allocation13_spill] sm:$0xff]  ;;  %v1379_v48 = vmul.f32 %v3834_v41, %v4750_v22  ;;  %v4995_v22 = vld [vmem:[#allocation18_spill] sm:$0xff] }
 0x673   :  { %3548 = vmatprep.subr.mxu1 %v1376_v24 }
 0x676   :  { %3549 = vmatpush3.xpose.msra.mxu1 %v1376_v24 }
 0x677   :  { %3550 = vmatprep.subr.mxu1 %v1375_v49 }
 0x67a   :  { %3551 = vmatpush3.xpose.msra.mxu1 %v1375_v49 }
 0x67b   :  { %3558 = vmatprep.subr.mxu1 %v4988_v61 }
 0x67d   :  { %3553 = vmatmul.mubr.f32.vlgmr.msra.gmra.mxu1 %v4558_v10 }
 0x67e   :  { %3555 = vmatprep.mubr.f32.mxu1 %v4561_v60  ;;  %3559 = vmatpush3.msra.mxu1 %v4988_v61 }
 0x67f   :  { %3560 = vmatprep.subr.mxu1 %v4989_v15 }
 0x680   :  { %3561 = vmatpush3.msra.mxu1 %v4989_v15 }
 0x681   :  { %3556 = vmatmul.mubr.f32.gmra.mxu1 %v4618_v8  ;;  %3562 = vmatprep.subr.mxu1 %v4990_v16 }
 0x682   :  { %3563 = vmatpush3.msra.mxu1 %v4990_v16  ;;  %v4997_v16 = vld [vmem:[#allocation20_spill] sm:$0xff] }
 0x683   :  { %3564 = vmatprep.subr.mxu1 %v4991_v53 }
 0x684   :  { %3565 = vmatpush3.msra.mxu1 %v4991_v53 }
 0x685   :  { %3572 = vmatprep.subr.mxu1 %v1382_v30 }
 0x6b5   :  { %v1338_v52 = vpop.xlane.xlu0 %1337 }
 0x6b6   :  { %3835 = vrcp.f32 %v1338_v52  ;;  %v3160_v52 = vld [vmem:[%s4947_s4] sm:$0xff] }
 0x6b9   :  { %v1334_v12 = vpop.xlane.xlu0 %1333 }
 0x6c3   :  { %v3836_v54 = vpop.eup %3835 }
 0x6c4   :  { %v1386_v39 = vmul.f32 %v3836_v54, %v4793_v44 }
 0x72d   :  { %v4836_v10 = vpop.f32.mrf.mxu1 }
 0x72f   :  { %v4839_v60 = vpop.f32.mrf.mxu1 }
 0x731   :  { %v4842_v8 = vpop.f32.mrf.mxu1 }
 0x733   :  { %v4845_v21 = vpop.f32.mrf.mxu1 }
 0x73d   :  { %v3554_v11 = vpop.f32.mrf.mxu1 }
 0x73f   :  { %v2472_v63 = vpop.f32.mrf.mxu1 }
 0x740   :  { %3566 = vmatprep.mubr.msk.f32.mxu1 %vm1500_vm1, %v2472_v63 }
 0x741   :  { %v3557_v37 = vpop.f32.mrf.mxu1  ;;  %3567 = vmatmul.mubr.msk.f32.vlgmr.msra.gmra.mxu1 %vm1500_vm1, %v3554_v11 }
 0x742   :  { %3573 = vmatpush3.xpose.msra.mxu1 %v1382_v30 }
 0x743   :  { %3574 = vmatprep.subr.mxu1 %v1381_v18  ;;  %v2482_v5 = vpop.f32.mrf.mxu1 }
 0x744   :  { %3569 = vmatprep.mubr.msk.f32.mxu1 %vm1500_vm1, %v2482_v5  ;;  %v3870_v5 = vmov 0  }
 0x745   :  { %3570 = vmatmul.mubr.msk.f32.gmra.mxu1 %vm1500_vm1, %v3557_v37  ;;  %3634 = vset.pattern.permute.xlu1 %v3870_v5 }
 0x746   :  { %3575 = vmatpush3.xpose.msra.mxu1 %v1381_v18  ;;  %3580 = vmatprep.mubr.f32.mxu1 %v4622_v13  ;;  %v4994_v13 = vld [vmem:[#allocation17_spill] sm:$0xff]  ;;  %v3023_v18 = vld [vmem:[%s4946_s3 + $0x8] sm:$0xff] }
 0x747   :  { %3576 = vmatprep.subr.mxu1 %v1380_v23  ;;  %3633 = vset.pattern.permute.xlu0 %v3870_v5 }
 0x748   :  { %3031 = vperm.xlu1 %3634, %v3023_v18   ;;  %3026 = vperm.xlu0 %3633, %v3022_v50  }
 0x74a   :  { %3577 = vmatpush3.xpose.msra.mxu1 %v1380_v23  ;;  %v3161_v23 = vld [vmem:[%s4947_s4 + $0x8] sm:$0xff] }
 0x74b   :  { %3578 = vmatprep.subr.mxu1 %v1379_v48 }
 0x74c   :  { %3164 = vperm.xlu1 %3634, %v3160_v52  }
 0x74e   :  { %3579 = vmatpush3.xpose.msra.mxu1 %v1379_v48 }
 0x74f   :  { %3586 = vmatprep.subr.mxu1 %v4992_v27 }
 0x750   :  { %3169 = vperm.xlu1 %3634, %v3161_v23  }
 0x751   :  { %3581 = vmatmul.mubr.f32.vlgmr.msra.gmra.mxu1 %v4630_v7  ;;  %v1336_v7 = vpop.xlane.xlu1 %1335 }
 0x752   :  { %3583 = vmatprep.mubr.f32.mxu1 %v4633_v35  ;;  %3587 = vmatpush3.msra.mxu1 %v4992_v27  ;;  %3837 = vrcp.f32 %v1336_v7 }
 0x753   :  { %3588 = vmatprep.subr.mxu1 %v4993_v2  ;;  %3839 = vrcp.f32 %v1334_v12 }
 0x754   :  { %3589 = vmatpush3.msra.mxu1 %v4993_v2 }
 0x755   :  { %3584 = vmatmul.mubr.f32.gmra.mxu1 %v4670_v43  ;;  %3590 = vmatprep.subr.mxu1 %v4994_v13  ;;  %v1332_v43 = vpop.xlane.xlu1 %1331 }
 0x756   :  { %3591 = vmatpush3.msra.mxu1 %v4994_v13  ;;  %3841 = vrcp.f32 %v1332_v43 }
 0x757   :  { %3592 = vmatprep.subr.mxu1 %v4995_v22 }
 0x758   :  { %3593 = vmatpush3.msra.mxu1 %v4995_v22 }
 0x759   :  { %3600 = vmatprep.subr.mxu1 %v1386_v39 }
 0x75f   :  { %v3838_v40 = vpop.eup %3837 }
 0x760   :  { %v1385_v24 = vmul.f32 %v3838_v40, %v4796_v4  ;;  %v3840_v3 = vpop.eup %3839  ;;  %v4996_v4 = vld [vmem:[#allocation19_spill] sm:$0xff] }
 0x761   :  { %v1384_v61 = vmul.f32 %v3840_v3, %v4798_v34  ;;  %v568_v34 = vpop.f32.mrf.mxu0 }
 0x763   :  { %v3842_v15 = vpop.eup %3841 }
 0x764   :  { %v1383_v33 = vmul.f32 %v3842_v15, %v4802_v58  ;;  %v4999_v58 = vld [vmem:[#allocation22_spill] sm:$0xff] }
 0x801   :  { %v4867_v35 = vpop.f32.mrf.mxu1 }
 0x803   :  { %v4869_v38 = vpop.f32.mrf.mxu1 }
 0x805   :  { %v4871_v42 = vpop.f32.mrf.mxu1 }
 0x807   :  { %v4873_v46 = vpop.f32.mrf.mxu1 }
 0x811   :  { %v3582_v6 = vpop.f32.mrf.mxu1 }
 0x813   :  { %v2670_v44 = vpop.f32.mrf.mxu1 }
 0x814   :  { %3594 = vmatprep.mubr.msk.f32.mxu1 %vm1500_vm1, %v2670_v44 }
 0x815   :  { %v3585_v62 = vpop.f32.mrf.mxu1  ;;  %3595 = vmatmul.mubr.msk.f32.vlgmr.msra.gmra.mxu1 %vm1500_vm1, %v3582_v6 }
 0x816   :  { %3601 = vmatpush3.xpose.msra.mxu1 %v1386_v39 }
 0x817   :  { %3602 = vmatprep.subr.mxu1 %v1385_v24  ;;  %v2680_v49 = vpop.f32.mrf.mxu1 }
 0x818   :  { %3597 = vmatprep.mubr.msk.f32.mxu1 %vm1500_vm1, %v2680_v49 }
 0x819   :  { %3598 = vmatmul.mubr.msk.f32.gmra.mxu1 %vm1500_vm1, %v3585_v62 }
 0x81a   :  { %3603 = vmatpush3.xpose.msra.mxu1 %v1385_v24  ;;  %3608 = vmatprep.mubr.f32.mxu1 %v4674_v55  ;;  %v4998_v55 = vld [vmem:[#allocation21_spill] sm:$0xff] }
 0x81b   :  { %3604 = vmatprep.subr.mxu1 %v1384_v61 }
 0x81e   :  { %3605 = vmatpush3.xpose.msra.mxu1 %v1384_v61 }
 0x81f   :  { %3606 = vmatprep.subr.mxu1 %v1383_v33 }
 0x822   :  { %3607 = vmatpush3.xpose.msra.mxu1 %v1383_v33 }
 0x823   :  { %3614 = vmatprep.subr.mxu1 %v4996_v4 }
 0x825   :  { %3609 = vmatmul.mubr.f32.vlgmr.msra.gmra.mxu1 %v4682_v32 }
 0x826   :  { %3611 = vmatprep.mubr.f32.mxu1 %v4692_v51  ;;  %3615 = vmatpush3.msra.mxu1 %v4996_v4 }
 0x827   :  { %3616 = vmatprep.subr.mxu1 %v4997_v16 }
 0x828   :  { %3617 = vmatpush3.msra.mxu1 %v4997_v16 }
 0x829   :  { %3612 = vmatmul.mubr.f32.gmra.mxu1 %v568_v34  ;;  %3618 = vmatprep.subr.mxu1 %v4998_v55 }
 0x82a   :  { %3619 = vmatpush3.msra.mxu1 %v4998_v55 }
 0x82b   :  { %3620 = vmatprep.subr.mxu1 %v4999_v58 }
 0x82c   :  { %3621 = vmatpush3.msra.mxu1 %v4999_v58 }
 0x8d5   :  { %v3596_v53 = vpop.f32.mrf.mxu1 }
 0x8d7   :  { %v2767_v32 = vpop.f32.mrf.mxu1 }
 0x8d9   :  { %v3599_v30 = vpop.f32.mrf.mxu1 }
 0x8db   :  { %v2777_v51 = vpop.f32.mrf.mxu1 }
 0x8e5   :  { %v3610_v11 = vpop.f32.mrf.mxu1 }
 0x8e7   :  { %v2868_v56 = vpop.f32.mrf.mxu1 }
 0x8e8   :  { %3622 = vmatprep.mubr.msk.f32.mxu1 %vm1500_vm1, %v2868_v56 }
 0x8e9   :  { %v3613_v63 = vpop.f32.mrf.mxu1  ;;  %3623 = vmatmul.mubr.msk.f32.vlgmr.msra.gmra.mxu1 %vm1500_vm1, %v3610_v11 }
 0x8eb   :  { %v2878_v37 = vpop.f32.mrf.mxu1 }
 0x8ec   :  { %3625 = vmatprep.mubr.msk.f32.mxu1 %vm1500_vm1, %v2878_v37 }
 0x8ed   :  { %3626 = vmatmul.mubr.msk.f32.gmra.mxu1 %vm1500_vm1, %v3613_v63 }
 0x9a9   :  { %v3624_v41 = vpop.f32.mrf.mxu1 }
 0x9ab   :  { %v2965_v48 = vpop.f32.mrf.mxu1 }
 0x9ad   :  { %v3627_v27 = vpop.f32.mrf.mxu1 }
 0x9ae   :  { %3034 = vmatprep.subr.mxu0 %v3627_v27 }
 0x9af   :  { %v2975_v2 = vpop.f32.mrf.mxu1  ;;  %3035 = vmatpush1.msra.mxu0 %v4811_v19 }
 0x9b0   :  { %3036 = vmatprep.subr.mxu0 %v2975_v2 }
 0x9b1   :  { %3037 = vmatpush1.msra.mxu0 %v4814_v28 }
 0x9b2   :  { %3038 = vmatprep.subr.mxu0 %v3624_v41 }
 0x9b3   :  { %3039 = vmatpush1.msra.mxu0 %v4806_v17 }
 0x9b4   :  { %3040 = vmatprep.subr.mxu0 %v2965_v48 }
 0x9b5   :  { %3041 = vmatpush1.msra.mxu0 %v4809_v59 }
 0x9b6   :  { %3042 = vmatprep.subr.mxu0 %v3599_v30 }
 0x9b7   :  { %3043 = vmatpush1.msra.mxu0 %v4752_v14 }
 0x9b8   :  { %3044 = vmatprep.subr.mxu0 %v2777_v51 }
 0x9b9   :  { %3045 = vmatpush1.msra.mxu0 %v4757_v57 }
 0x9ba   :  { %3046 = vmatprep.subr.mxu0 %v3596_v53 }
 0x9bb   :  { %3047 = vmatpush1.msra.mxu0 %v4739_v1 }
 0x9bc   :  { %3048 = vmatprep.subr.mxu0 %v2767_v32 }
 0x9bd   :  { %3049 = vmatpush1.msra.mxu0 %v4748_v47 }
 0x9be   :  { %3050 = vmatprep.subr.mxu0 %v4871_v42 }
 0x9bf   :  { %3051 = vmatpush1.msra.mxu0 %v4668_v29  ;;  %v3027_v29 = vpop.permute.xlu0 %3026 }
 0x9c0   :  { %3052 = vmatprep.subr.mxu0 %v4873_v46 }
 0x9c1   :  { %3053 = vmatpush1.msra.mxu0 %v4672_v25  ;;  %v3032_v25 = vpop.permute.xlu1 %3031 }
 0x9c2   :  { %3054 = vmatprep.subr.mxu0 %v4867_v35 }
 0x9c3   :  { %3055 = vmatpush1.msra.mxu0 %v4664_v26  ;;  %v2988_v26 = vld [vmem:[%s4945_s2] sm:$0xff] }
 0x9c4   :  { %3056 = vmatprep.subr.mxu0 %v4869_v38 }
 0x9c5   :  { %3057 = vmatpush1.msra.mxu0 %v4666_v0  ;;  %v3165_v37 = vpop.permute.xlu1 %3164 }
 0x9c6   :  { %3058 = vmatprep.subr.mxu0 %v4842_v8 }
 0x9c7   :  { %3059 = vmatpush1.msra.mxu0 %v4616_v45  ;;  %v2989_v45 = vld [vmem:[%s4945_s2 + $0x8] sm:$0xff]  ;;  %s3871_s2 = smov [#allocation4]  }
 0x9c8   :  { %3060 = vmatprep.subr.mxu0 %v4845_v21  ;;  %s3185_s27 = sshll.u32 %s3871_s2, 4  ;;  %s3186_s27 = int_to_ptr.vmem [resolvable:$true] %s3185_s27 }
 0x9c9   :  { %3061 = vmatpush1.msra.mxu0 %v4620_v36  ;;  %v3170_v23 = vpop.permute.xlu1 %3169  ;;  %s3847_s28 = scalar_lea.vmem %s3186_s27, 512  ;;  %p3852_p1 = scmp.lt.s32.totalorder %s3186_s27, %s3186_s27 }
 0x9ca   :  { %3062 = vmatprep.subr.mxu0 %v4836_v10  ;;  %p3848_p0 = scmp.ne.s32.totalorder %s3186_s27, %s3847_s28  ;;  %p3853_p2 = scmp.lt.s32.totalorder %s3847_s28, %s3847_s28 }
 0x9cb   :  { %3063 = vmatpush1.msra.mxu0 %v4612_v31 }
 0x9cc   :  { %3064 = vmatprep.subr.mxu0 %v4839_v60  ;;  %p3854_p3 = por %p3853_p2, %p3852_p1 }
 0x9cd   :  { %3065 = vmatpush1.msra.mxu0 %v4614_v20 }
 0x9ce   :  { %3099 = vmatmul.mubr.f32.vlgmr.msra.gmra.mxu0 %v2988_v26  ;;  %p3855_p4 = pnand %p3854_p3, %p3848_p0 }
 0x9cf   :  { %3104 = vmatprep.mubr.f32.mxu0 %v4983_v9 }
 0x9d2   :  { %3105 = vmatmul.mubr.f32.gmra.mxu0 %v2989_v45 }
 0xa8e   :  { %v3100_v36 = vpop.f32.mrf.mxu0 }
 0xa8f   :  { %v3101_v47 = vadd.f32 %v3100_v36, %v3027_v29 }
 0xa90   :  { %v3102_v0 = vpop.f32.mrf.mxu0 }
 0xa91   :  { %v3103_v57 = vadd.f32 %v3102_v0, %v3027_v29 }
 0xa92   :  { %v3106_v31 = vpop.f32.mrf.mxu0 }
 0xa93   :  { %v3107_v1 = vadd.f32 %v3106_v31, %v3032_v25 }
 0xa94   :  { %v3108_v14 = vpop.f32.mrf.mxu0 }
 0xa95   :  { %v3111_v17 = vadd.f32 %v3107_v1, %v3101_v47  ;;  %v3109_v59 = vadd.f32 %v3108_v14, %v3032_v25 }
 0xa97   :  { %v3112_v20 = vrot.slane %v3111_v17, 4  ;;  %v3118_v19 = vadd.f32 %v3109_v59, %v3103_v57 }
 0xa99   :  { %v3113_v28 = vadd.f32 %v3112_v20, %v3111_v17  ;;  %v3119_v9 = vrot.slane %v3118_v19, 4 }
 0xa9b   :  { %v3114_v10 = vrot.slane %v3113_v28, 2  ;;  %v3120_v60 = vadd.f32 %v3119_v9, %v3118_v19 }
 0xa9d   :  { %v3115_v8 = vadd.f32 %v3114_v10, %v3113_v28  ;;  %v3121_v21 = vrot.slane %v3120_v60, 2 }
 0xa9f   :  { %v3116_v54 = vrot.slane %v3115_v8, 1  ;;  %v3122_v13 = vadd.f32 %v3121_v21, %v3120_v60 }
 0xaa1   :  { %v3117_v22 = vadd.f32 %v3116_v54, %v3115_v8  ;;  %v3123_v39 = vrot.slane %v3122_v13, 1 }
 0xaa3   :  { %v3126_v7 = vmul.f32 0.0625, %v3117_v22  ;;  %v3124_v35 = vadd.f32 %v3123_v39, %v3122_v13 }
 0xaa5   :  { %v3128_v12 = vsub.f32 %v3101_v47, %v3126_v7  ;;  %v3130_v38 = vsub.f32 %v3107_v1, %v3126_v7  ;;  %v3127_v43 = vmul.f32 0.0625, %v3124_v35 }
 0xaa7   :  { %v3132_v42 = vmul.f32 %v3128_v12, %v3128_v12  ;;  %v3134_v46 = vmul.f32 %v3130_v38, %v3130_v38  ;;  %v3131_v6 = vsub.f32 %v3109_v59, %v3127_v43  ;;  %v3129_v40 = vsub.f32 %v3103_v57, %v3127_v43 }
 0xaa9   :  { %v3136_v44 = vadd.f32 %v3134_v46, %v3132_v42  ;;  %v3135_v62 = vmul.f32 %v3131_v6, %v3131_v6  ;;  %v3133_v24 = vmul.f32 %v3129_v40, %v3129_v40 }
 0xaab   :  { %v3137_v3 = vrot.slane %v3136_v44, 4  ;;  %v3143_v49 = vadd.f32 %v3135_v62, %v3133_v24 }
 0xaad   :  { %v3138_v61 = vadd.f32 %v3137_v3, %v3136_v44  ;;  %v3144_v15 = vrot.slane %v3143_v49, 4 }
 0xaaf   :  { %v3139_v33 = vrot.slane %v3138_v61, 2  ;;  %v3145_v4 = vadd.f32 %v3144_v15, %v3143_v49 }
 0xab1   :  { %v3140_v16 = vadd.f32 %v3139_v33, %v3138_v61  ;;  %v3146_v34 = vrot.slane %v3145_v4, 2 }
 0xab3   :  { %v3141_v55 = vrot.slane %v3140_v16, 1  ;;  %v3147_v58 = vadd.f32 %v3146_v34, %v3145_v4 }
 0xab5   :  { %v3142_v53 = vadd.f32 %v3141_v55, %v3140_v16  ;;  %v3148_v32 = vrot.slane %v3147_v58, 1 }
 0xab7   :  { %v3150_v30 = vmul.f32 0.0625, %v3142_v53  ;;  %v3149_v51 = vadd.f32 %v3148_v32, %v3147_v58 }
 0xab9   :  { %v3152_v11 = vadd.f32 1e-05, %v3150_v30  ;;  %v3151_v56 = vmul.f32 0.0625, %v3149_v51 }
 0xabb   :  { %3843 = vrsqrt.f32 %v3152_v11  ;;  %v3153_v63 = vadd.f32 1e-05, %v3151_v56 }
 0xabd   :  { %3845 = vrsqrt.f32 %v3153_v63 }
 0xac8   :  { %v3844_v18 = vpop.eup %3843 }
 0xac9   :  { %v3156_v50 = vmul.f32 %v3844_v18, %v3128_v12  ;;  %v3158_v5 = vmul.f32 %v3844_v18, %v3130_v38 }
 0xaca   :  { %v3846_v52 = vpop.eup %3845 }
 0xacb   :  { %v3157_v41 = vmul.f32 %v3846_v52, %v3129_v40  ;;  %v3172_v48 = vmul.f32 %v3165_v37, %v3156_v50  ;;  %v3159_v27 = vmul.f32 %v3846_v52, %v3131_v6  ;;  %v3174_v2 = vmul.f32 %v3170_v23, %v3158_v5 }
 0xacd   :  { %v3173_v26 = vmul.f32 %v3165_v37, %v3157_v41  ;;  %3176 = vst [vmem:[#allocation4] sm:$0xff] %v3172_v48  ;;  %v3175_v45 = vmul.f32 %v3170_v23, %v3159_v27  ;;  %3178 = vst [vmem:[#allocation4 + $0x10] sm:$0xff] %v3174_v2 }
 0xacf   :  { %3177 = vst [vmem:[#allocation4 + $0x8] sm:$0xff] %v3173_v26  ;;  %3179 = vst [vmem:[#allocation4 + $0x18] sm:$0xff] %v3175_v45 }
 0xad0   :  { %3858 = shalt.err (!%p3855_p4)
}
 0xad1   :  { %s3872_s29 = smov 256   ;;  %s3873_s0 = smov 16  }
 0xad2   :  { %3191 = dma.vmem_to_hbm [thread:$0]  %s3186_s27, 512, %s4948_s5, [#allocation5], %s3872_s29, %s3872_s29, %s3873_s0  }
 0xad3   :  { %3867 = dma.done.wait [#allocation5], 512  }
 0xad4   :  { %3868 = vsyncadd [#allocation5], 4294966784 }
 0xad5   :  { %3195 = vsyncpa [#allocation5], 1 }

</bundles_post_ra>
